<compile_context>
chip_gen: v5e
topology: v5e:2x2
jax: 0.10.0
libtpu: 0.0.40
codegen_flags: <defaults>
</compile_context>

<pallas_src>
import numpy as np
import jax
import jax.numpy as jnp
from jax.experimental import pallas as pl
from jax.experimental.pallas import tpu as pltpu


# ----------------------------------------------------------------------------- kernel

def autoenc_kernel(x_ref, a1_ref, a2_ref, mt1_ref, mt2_ref, ws_ref, b_ref,
                   dec_ref, enc_ref):
    f32 = jnp.float32

    def mm(a, b):
        return jnp.dot(a, b, preferred_element_type=f32)

    def qrelu1(v):
        # QuantReLU(bit_width=1): hard threshold at 0.5 (ReLU + 1-bit fake quant of [0,1]).
        return (v >= 0.5).astype(f32)

    def qrelu8(v):
        # QuantReLU(bit_width=8): ReLU + 255-level fake quant of [0,1], round half up.
        return jnp.floor(jnp.clip(v, 0.0, 1.0) * 255.0 + 0.5) * (1.0 / 255.0)

    x = x_ref[...]                                               # (TB, 48) flat 4x12 input

    # ---- encoder: Conv2d(1,48,3,p=1) + QuantReLU(1) + MaxPool(2,2), fully folded ----
    c = jnp.maximum(jnp.maximum(mm(x, a1_ref[0]), mm(x, a1_ref[1])),
                    jnp.maximum(mm(x, a1_ref[2]), mm(x, a1_ref[3])))
    p1 = qrelu1(c + b_ref[0][:, :576])                           # (TB, 576) [s(2x6), c48]

    # ---- encoder: Conv2d(48,24,3,p=1) + QuantReLU(1) + MaxPool(2,2), fully folded ----
    d = jnp.maximum(jnp.maximum(mm(p1, a2_ref[0]), mm(p1, a2_ref[1])),
                    jnp.maximum(mm(p1, a2_ref[2]), mm(p1, a2_ref[3])))
    p2 = qrelu1(d + b_ref[1][:, :72])                            # (TB, 72) [w3, c24]

    # ---- encoder MLP (Flatten permutation folded into the weights host-side) ----
    h = qrelu1(mm(p2, ws_ref[0][:, :48]) + b_ref[2][:, :48])     # Linear(72,48)
    h = qrelu1(mm(h, ws_ref[1][:48, :24]) + b_ref[3][:, :24])    # Linear(48,24)
    e = qrelu1(mm(h, ws_ref[2][:24, :16]) + b_ref[4][:, :16])    # Linear(24,12)+4 zero pads
    enc = jnp.minimum(e, 1.0)                                    # torch.clamp(max=1)
    enc_ref[...] = enc                                           # (TB, 16) lane-dense store

    # ---- decoder MLP (Unflatten permutation folded into the weights host-side) ----
    u = qrelu8(mm(enc, ws_ref[3][:16, :24]) + b_ref[5][:, :24])  # Linear(12,24)
    u = qrelu8(mm(u, ws_ref[4][:24, :48]) + b_ref[6][:, :48])    # Linear(24,48)
    u = qrelu8(mm(u, ws_ref[5][:48, :72]) + b_ref[7][:, :72])    # Linear(48,72) -> [w3, c24]

    # ---- ConvTranspose2d(24,48,2,s=2): (1,3) -> (2,6), one matmul ----
    o1 = qrelu8(mm(u, mt1_ref[...]) + b_ref[8][:, :576])         # (TB, 576) [s(2x6), c48]

    # ---- ConvTranspose2d(48,1,2,s=2): (2,6) -> (4,12), one matmul + Sigmoid ----
    o2 = mm(o1, mt2_ref[...]) + b_ref[9][:, :48]                 # (TB, 48) flat 4x12
    dec_ref[...] = 0.5 * (jnp.tanh(0.5 * o2) + 1.0)              # stable sigmoid


# ----------------------------------------------------------------------------- params

def init_params(key):
    ks = jax.random.split(key, 20)

    def u(k, shape, fan_in):
        bound = 1.0 / np.sqrt(float(fan_in))
        return np.asarray(jax.random.uniform(k, shape, jnp.float32, -bound, bound))

    # Deterministic synthetic parameters in PyTorch layouts
    W1  = u(ks[0],  (48, 1, 3, 3), 9);     b1  = u(ks[1],  (48,), 9)
    W2  = u(ks[2],  (24, 48, 3, 3), 432);  b2  = u(ks[3],  (24,), 432)
    W3  = u(ks[4],  (48, 72), 72);         b3  = u(ks[5],  (48,), 72)
    W4  = u(ks[6],  (24, 48), 48);         b4  = u(ks[7],  (24,), 48)
    W5  = u(ks[8],  (12, 24), 24);         b5  = u(ks[9],  (12,), 24)
    Wd1 = u(ks[10], (24, 12), 12);         bd1 = u(ks[11], (24,), 12)
    Wd2 = u(ks[12], (48, 24), 24);         bd2 = u(ks[13], (48,), 24)
    Wd3 = u(ks[14], (72, 48), 48);         bd3 = u(ks[15], (72,), 48)
    Wt1 = u(ks[16], (24, 48, 2, 2), 96);   bt1 = u(ks[17], (48,), 96)
    Wt2 = u(ks[18], (48, 1, 2, 2), 192);   bt2 = u(ks[19], (1,), 192)

    # -- Conv1 (1->48,3x3,p=1) folded with MaxPool(2,2) candidates: (4, 48, 12*48) --
    A1 = np.zeros((4, 48, 12 * 48), np.float32)
    for i in range(2):
        for j in range(2):
            a = i * 2 + j
            for hp in range(2):
                for wp in range(6):
                    s = hp * 6 + wp
                    for kh in range(3):
                        for kw in range(3):
                            hi = 2 * hp + i + kh - 1
                            wi = 2 * wp + j + kw - 1
                            if 0 <= hi < 4 and 0 <= wi < 12:
                                A1[a, hi * 12 + wi, s * 48:(s + 1) * 48] += W1[:, 0, kh, kw]

    # -- Conv2 (48->24,3x3,p=1) folded with MaxPool(2,2) candidates: (4, 576, 3*24) --
    A2 = np.zeros((4, 12 * 48, 3 * 24), np.float32)
    for i in range(2):
        for j in range(2):
            a = i * 2 + j
            for wp in range(3):
                for kh in range(3):
                    for kw in range(3):
                        hi = i + kh - 1
                        wi = 2 * wp + j + kw - 1
                        if 0 <= hi < 2 and 0 <= wi < 6:
                            r = hi * 6 + wi
                            A2[a, r * 48:(r + 1) * 48, wp * 24:(wp + 1) * 24] += \
                                W2[:, :, kh, kw].T
    # -- Linear(72,48): fold torch Flatten order (j = c*3 + w) into the weight rows --
    W3p = np.zeros((72, 48), np.float32)
    for c in range(24):
        for w in range(3):
            W3p[w * 24 + c, :] = W3[:, c * 3 + w]

    # -- Linear(24,12) padded to 16 outputs (zero cols) for a lane-dense encoded slab --
    W5p = np.zeros((24, 16), np.float32); W5p[:, :12] = W5.T
    b5p = np.zeros((16,), np.float32);    b5p[:12] = b5
    Wd1p = np.zeros((16, 24), np.float32); Wd1p[:12, :] = Wd1.T

    # -- Linear(48,72)+Unflatten(24,1,3): fold permutation (j = c*3 + w) into weights --
    Wd3p = np.zeros((48, 72), np.float32)
    bd3p = np.zeros((72,), np.float32)
    for c in range(24):
        for w in range(3):
            Wd3p[:, w * 24 + c] = Wd3[c * 3 + w, :]
            bd3p[w * 24 + c] = bd3[c * 3 + w]

    # -- ConvTranspose2d(24,48,2,s=2): scatter x weight folded into (72, 576) --
    MT1 = np.zeros((72, 12 * 48), np.float32)
    for wp in range(3):
        for kh in range(2):
            for kw in range(2):
                s = kh * 6 + (2 * wp + kw)
                MT1[wp * 24:(wp + 1) * 24, s * 48:(s + 1) * 48] = Wt1[:, :, kh, kw]

    # -- ConvTranspose2d(48,1,2,s=2): scatter x weight folded into (576, 48) --
    MT2 = np.zeros((12 * 48, 48), np.float32)
    for h in range(2):
        for w in range(6):
            r = h * 6 + w
            for kh in range(2):
                for kw in range(2):
                    so = (2 * h + kh) * 12 + (2 * w + kw)
                    MT2[r * 48:(r + 1) * 48, so] = Wt2[:, 0, kh, kw]

    # -- consolidate the 6 small linear weights into one packed array --
    WS = np.zeros((6, 72, 72), np.float32)
    WS[0, :72, :48] = W3p
    WS[1, :48, :24] = W4.T
    WS[2, :24, :16] = W5p
    WS[3, :16, :24] = Wd1p
    WS[4, :24, :48] = Wd2.T
    WS[5, :48, :72] = Wd3p

    # -- consolidate all (spatially tiled) biases into one packed table --
    B = np.zeros((10, 1, 576), np.float32)
    B[0, 0, :576] = np.tile(b1, 12)
    B[1, 0, :72] = np.tile(b2, 3)
    B[2, 0, :48] = b3
    B[3, 0, :24] = b4
    B[4, 0, :16] = b5p
    B[5, 0, :24] = bd1
    B[6, 0, :48] = bd2
    B[7, 0, :72] = bd3p
    B[8, 0, :576] = np.tile(bt1, 12)
    B[9, 0, :48] = bt2[0]

    return {'a1': jnp.asarray(A1), 'a2': jnp.asarray(A2),
            'mt1': jnp.asarray(MT1), 'mt2': jnp.asarray(MT2),
            'ws': jnp.asarray(WS), 'biases': jnp.asarray(B)}


# ----------------------------------------------------------------------------- wrapper

def _round_up(a, m):
    return (a + m - 1) // m * m


def conv_autoencoder_forward(x, params, *, batch_tile=128):
    N = x.shape[0]
    xf = x.reshape(N, 48).astype(jnp.float32)        # flatten NCHW (N,1,4,12) -> (N,48)

    tb = min(batch_tile, _round_up(N, 8))             # batch tile, multiple of 8 sublanes
    n_pad = _round_up(N, tb)
    if n_pad != N:
        xf = jnp.pad(xf, ((0, n_pad - N), (0, 0)))

    weights = (params['a1'], params['a2'], params['mt1'], params['mt2'],
               params['ws'], params['biases'])

    def const_spec(a):
        zeros = (0,) * a.ndim
        return pl.BlockSpec(a.shape, lambda n, _z=zeros: _z)

    dec, enc = pl.pallas_call(
        autoenc_kernel,
        out_shape=(jax.ShapeDtypeStruct((n_pad, 48), jnp.float32),
                   jax.ShapeDtypeStruct((n_pad, 16), jnp.float32)),
        grid_spec=pltpu.PrefetchScalarGridSpec(
            num_scalar_prefetch=0,
            grid=(n_pad // tb,),
            in_specs=[pl.BlockSpec((tb, 48), lambda n: (n, 0))]
                     + [const_spec(a) for a in weights],
            out_specs=[pl.BlockSpec((tb, 48), lambda n: (n, 0)),
                       pl.BlockSpec((tb, 16), lambda n: (n, 0))]),
        compiler_params=pltpu.CompilerParams(
            dimension_semantics=("parallel",)),       # batch axis: megacore-shardable
    )(xf, *weights)

    decoded = dec[:N].reshape(N, 1, 4, 12)            # back to NCHW
    encoded = enc[:N, :12]                            # drop the 4 zero pad lanes
    return decoded, encoded


# ----------------------------------------------------------------------------- main

if __name__ == "__main__":
    key = jax.random.PRNGKey(0)
    pkey, xkey = jax.random.split(key)
    params = init_params(pkey)

    N = 2
    # Input shape implied by the module: NCHW (N, 1, 4, 12)
    x = jax.random.uniform(xkey, (N, 1, 4, 12), jnp.float32)

    decoded, encoded = conv_autoencoder_forward(x, params)
    jax.block_until_ready((decoded, encoded))

    assert decoded.shape == (N, 1, 4, 12)
    assert encoded.shape == (N, 12)
    assert bool(jnp.isfinite(decoded).all()) and bool(jnp.isfinite(encoded).all())
    assert bool((decoded > 0.0).all()) and bool((decoded < 1.0).all())
    assert bool((encoded >= 0.0).all()) and bool((encoded <= 1.0).all())

    print("KERNEL_OK")
</pallas_src>

<mosaic_0001>
module attributes {stable_mosaic.version = 11 : i64} {
  func.func @autoenc_kernel(%arg0: i32, %arg1: memref<8x48xf32, #tpu.memory_space<vmem>>, %arg2: memref<4x48x576xf32, #tpu.memory_space<vmem>>, %arg3: memref<4x576x72xf32, #tpu.memory_space<vmem>>, %arg4: memref<72x576xf32, #tpu.memory_space<vmem>>, %arg5: memref<576x48xf32, #tpu.memory_space<vmem>>, %arg6: memref<6x72x72xf32, #tpu.memory_space<vmem>>, %arg7: memref<10x1x576xf32, #tpu.memory_space<vmem>>, %arg8: memref<8x48xf32, #tpu.memory_space<vmem>>, %arg9: memref<8x16xf32, #tpu.memory_space<vmem>>) attributes {dimension_semantics = [#tpu.dimension_semantics<parallel>], iteration_bounds = array<i64: 1>, scalar_prefetch = 0 : i64, scratch_operands = 0 : i64, tpu.core_type = #tpu.core_type<tc>, window_params = [{transform_indices = @transform_0, window_bounds = array<i64: 8, 48>}, {pipeline_mode = #tpu.pipeline_mode<synchronous>, transform_indices = @transform_1, window_bounds = array<i64: 4, 48, 576>}, {pipeline_mode = #tpu.pipeline_mode<synchronous>, transform_indices = @transform_2, window_bounds = array<i64: 4, 576, 72>}, {pipeline_mode = #tpu.pipeline_mode<synchronous>, transform_indices = @transform_3, window_bounds = array<i64: 72, 576>}, {pipeline_mode = #tpu.pipeline_mode<synchronous>, transform_indices = @transform_4, window_bounds = array<i64: 576, 48>}, {pipeline_mode = #tpu.pipeline_mode<synchronous>, transform_indices = @transform_5, window_bounds = array<i64: 6, 72, 72>}, {pipeline_mode = #tpu.pipeline_mode<synchronous>, transform_indices = @transform_6, window_bounds = array<i64: 10, 1, 576>}, {transform_indices = @transform_7, window_bounds = array<i64: 8, 48>}, {transform_indices = @transform_8, window_bounds = array<i64: 8, 16>}]} {
    %c0 = arith.constant 0 : index
    %c0_0 = arith.constant 0 : index
    %0 = vector.load %arg1[%c0, %c0_0] : memref<8x48xf32, #tpu.memory_space<vmem>>, vector<8x48xf32>
    %c0_1 = arith.constant 0 : index
    %c0_2 = arith.constant 0 : index
    %c0_3 = arith.constant 0 : index
    %1 = vector.load %arg2[%c0_1, %c0_2, %c0_3] : memref<4x48x576xf32, #tpu.memory_space<vmem>>, vector<1x48x576xf32>
    %2 = vector.shape_cast %1 : vector<1x48x576xf32> to vector<48x576xf32>
    %cst = arith.constant dense<0.000000e+00> : vector<8x576xf32>
    %3 = tpu.matmul %0, %2, %cst {dimension_numbers = #tpu.dot_dimension_numbers<[1], [0], [0], [1], [0, 0, 1, 1], [], []>} : vector<8x48xf32>, vector<48x576xf32>, vector<8x576xf32> -> vector<8x576xf32>
    %c1 = arith.constant 1 : index
    %c0_4 = arith.constant 0 : index
    %c0_5 = arith.constant 0 : index
    %4 = vector.load %arg2[%c1, %c0_4, %c0_5] : memref<4x48x576xf32, #tpu.memory_space<vmem>>, vector<1x48x576xf32>
    %5 = vector.shape_cast %4 : vector<1x48x576xf32> to vector<48x576xf32>
    %cst_6 = arith.constant dense<0.000000e+00> : vector<8x576xf32>
    %6 = tpu.matmul %0, %5, %cst_6 {dimension_numbers = #tpu.dot_dimension_numbers<[1], [0], [0], [1], [0, 0, 1, 1], [], []>} : vector<8x48xf32>, vector<48x576xf32>, vector<8x576xf32> -> vector<8x576xf32>
    %7 = arith.maximumf %3, %6 : vector<8x576xf32>
    %c2 = arith.constant 2 : index
    %c0_7 = arith.constant 0 : index
    %c0_8 = arith.constant 0 : index
    %8 = vector.load %arg2[%c2, %c0_7, %c0_8] : memref<4x48x576xf32, #tpu.memory_space<vmem>>, vector<1x48x576xf32>
    %9 = vector.shape_cast %8 : vector<1x48x576xf32> to vector<48x576xf32>
    %cst_9 = arith.constant dense<0.000000e+00> : vector<8x576xf32>
    %10 = tpu.matmul %0, %9, %cst_9 {dimension_numbers = #tpu.dot_dimension_numbers<[1], [0], [0], [1], [0, 0, 1, 1], [], []>} : vector<8x48xf32>, vector<48x576xf32>, vector<8x576xf32> -> vector<8x576xf32>
    %c3 = arith.constant 3 : index
    %c0_10 = arith.constant 0 : index
    %c0_11 = arith.constant 0 : index
    %11 = vector.load %arg2[%c3, %c0_10, %c0_11] : memref<4x48x576xf32, #tpu.memory_space<vmem>>, vector<1x48x576xf32>
    %12 = vector.shape_cast %11 : vector<1x48x576xf32> to vector<48x576xf32>
    %cst_12 = arith.constant dense<0.000000e+00> : vector<8x576xf32>
    %13 = tpu.matmul %0, %12, %cst_12 {dimension_numbers = #tpu.dot_dimension_numbers<[1], [0], [0], [1], [0, 0, 1, 1], [], []>} : vector<8x48xf32>, vector<48x576xf32>, vector<8x576xf32> -> vector<8x576xf32>
    %14 = arith.maximumf %10, %13 : vector<8x576xf32>
    %15 = arith.maximumf %7, %14 : vector<8x576xf32>
    %c0_13 = arith.constant 0 : index
    %c0_14 = arith.constant 0 : index
    %c0_15 = arith.constant 0 : index
    %16 = vector.load %arg7[%c0_13, %c0_14, %c0_15] : memref<10x1x576xf32, #tpu.memory_space<vmem>>, vector<1x1x576xf32>
    %17 = vector.shape_cast %16 : vector<1x1x576xf32> to vector<1x576xf32>
    %18 = vector.broadcast %17 : vector<1x576xf32> to vector<8x576xf32>
    %19 = arith.addf %15, %18 : vector<8x576xf32>
    %cst_16 = arith.constant 5.000000e-01 : f32
    %20 = vector.broadcast %cst_16 : f32 to vector<8x576xf32>
    %21 = arith.cmpf oge, %19, %20 : vector<8x576xf32>
    %22 = arith.extui %21 : vector<8x576xi1> to vector<8x576xi32>
    %23 = arith.sitofp %22 : vector<8x576xi32> to vector<8x576xf32>
    %c0_17 = arith.constant 0 : index
    %c0_18 = arith.constant 0 : index
    %c0_19 = arith.constant 0 : index
    %24 = vector.load %arg3[%c0_17, %c0_18, %c0_19] : memref<4x576x72xf32, #tpu.memory_space<vmem>>, vector<1x576x72xf32>
    %25 = vector.shape_cast %24 : vector<1x576x72xf32> to vector<576x72xf32>
    %cst_20 = arith.constant dense<0.000000e+00> : vector<8x72xf32>
    %26 = tpu.matmul %23, %25, %cst_20 {dimension_numbers = #tpu.dot_dimension_numbers<[1], [0], [0], [1], [0, 0, 1, 1], [], []>} : vector<8x576xf32>, vector<576x72xf32>, vector<8x72xf32> -> vector<8x72xf32>
    %c1_21 = arith.constant 1 : index
    %c0_22 = arith.constant 0 : index
    %c0_23 = arith.constant 0 : index
    %27 = vector.load %arg3[%c1_21, %c0_22, %c0_23] : memref<4x576x72xf32, #tpu.memory_space<vmem>>, vector<1x576x72xf32>
    %28 = vector.shape_cast %27 : vector<1x576x72xf32> to vector<576x72xf32>
    %cst_24 = arith.constant dense<0.000000e+00> : vector<8x72xf32>
    %29 = tpu.matmul %23, %28, %cst_24 {dimension_numbers = #tpu.dot_dimension_numbers<[1], [0], [0], [1], [0, 0, 1, 1], [], []>} : vector<8x576xf32>, vector<576x72xf32>, vector<8x72xf32> -> vector<8x72xf32>
    %30 = arith.maximumf %26, %29 : vector<8x72xf32>
    %c2_25 = arith.constant 2 : index
    %c0_26 = arith.constant 0 : index
    %c0_27 = arith.constant 0 : index
    %31 = vector.load %arg3[%c2_25, %c0_26, %c0_27] : memref<4x576x72xf32, #tpu.memory_space<vmem>>, vector<1x576x72xf32>
    %32 = vector.shape_cast %31 : vector<1x576x72xf32> to vector<576x72xf32>
    %cst_28 = arith.constant dense<0.000000e+00> : vector<8x72xf32>
    %33 = tpu.matmul %23, %32, %cst_28 {dimension_numbers = #tpu.dot_dimension_numbers<[1], [0], [0], [1], [0, 0, 1, 1], [], []>} : vector<8x576xf32>, vector<576x72xf32>, vector<8x72xf32> -> vector<8x72xf32>
    %c3_29 = arith.constant 3 : index
    %c0_30 = arith.constant 0 : index
    %c0_31 = arith.constant 0 : index
    %34 = vector.load %arg3[%c3_29, %c0_30, %c0_31] : memref<4x576x72xf32, #tpu.memory_space<vmem>>, vector<1x576x72xf32>
    %35 = vector.shape_cast %34 : vector<1x576x72xf32> to vector<576x72xf32>
    %cst_32 = arith.constant dense<0.000000e+00> : vector<8x72xf32>
    %36 = tpu.matmul %23, %35, %cst_32 {dimension_numbers = #tpu.dot_dimension_numbers<[1], [0], [0], [1], [0, 0, 1, 1], [], []>} : vector<8x576xf32>, vector<576x72xf32>, vector<8x72xf32> -> vector<8x72xf32>
    %37 = arith.maximumf %33, %36 : vector<8x72xf32>
    %38 = arith.maximumf %30, %37 : vector<8x72xf32>
    %c1_33 = arith.constant 1 : index
    %c0_34 = arith.constant 0 : index
    %c0_35 = arith.constant 0 : index
    %39 = vector.load %arg7[%c1_33, %c0_34, %c0_35] : memref<10x1x576xf32, #tpu.memory_space<vmem>>, vector<1x1x576xf32>
    %40 = vector.shape_cast %39 : vector<1x1x576xf32> to vector<1x576xf32>
    %41 = vector.extract_strided_slice %40 {offsets = [0, 0], sizes = [1, 72], strides = [1, 1]} : vector<1x576xf32> to vector<1x72xf32>
    %42 = vector.broadcast %41 : vector<1x72xf32> to vector<8x72xf32>
    %43 = arith.addf %38, %42 : vector<8x72xf32>
    %cst_36 = arith.constant 5.000000e-01 : f32
    %44 = vector.broadcast %cst_36 : f32 to vector<8x72xf32>
    %45 = arith.cmpf oge, %43, %44 : vector<8x72xf32>
    %46 = arith.extui %45 : vector<8x72xi1> to vector<8x72xi32>
    %47 = arith.sitofp %46 : vector<8x72xi32> to vector<8x72xf32>
    %c0_37 = arith.constant 0 : index
    %c0_38 = arith.constant 0 : index
    %c0_39 = arith.constant 0 : index
    %48 = vector.load %arg6[%c0_37, %c0_38, %c0_39] : memref<6x72x72xf32, #tpu.memory_space<vmem>>, vector<1x72x72xf32>
    %49 = vector.shape_cast %48 : vector<1x72x72xf32> to vector<72x72xf32>
    %50 = vector.extract_strided_slice %49 {offsets = [0, 0], sizes = [72, 48], strides = [1, 1]} : vector<72x72xf32> to vector<72x48xf32>
    %cst_40 = arith.constant dense<0.000000e+00> : vector<8x48xf32>
    %51 = tpu.matmul %47, %50, %cst_40 {dimension_numbers = #tpu.dot_dimension_numbers<[1], [0], [0], [1], [0, 0, 1, 1], [], []>} : vector<8x72xf32>, vector<72x48xf32>, vector<8x48xf32> -> vector<8x48xf32>
    %c2_41 = arith.constant 2 : index
    %c0_42 = arith.constant 0 : index
    %c0_43 = arith.constant 0 : index
    %52 = vector.load %arg7[%c2_41, %c0_42, %c0_43] : memref<10x1x576xf32, #tpu.memory_space<vmem>>, vector<1x1x576xf32>
    %53 = vector.shape_cast %52 : vector<1x1x576xf32> to vector<1x576xf32>
    %54 = vector.extract_strided_slice %53 {offsets = [0, 0], sizes = [1, 48], strides = [1, 1]} : vector<1x576xf32> to vector<1x48xf32>
    %55 = vector.broadcast %54 : vector<1x48xf32> to vector<8x48xf32>
    %56 = arith.addf %51, %55 : vector<8x48xf32>
    %cst_44 = arith.constant 5.000000e-01 : f32
    %57 = vector.broadcast %cst_44 : f32 to vector<8x48xf32>
    %58 = arith.cmpf oge, %56, %57 : vector<8x48xf32>
    %59 = arith.extui %58 : vector<8x48xi1> to vector<8x48xi32>
    %60 = arith.sitofp %59 : vector<8x48xi32> to vector<8x48xf32>
    %c1_45 = arith.constant 1 : index
    %c0_46 = arith.constant 0 : index
    %c0_47 = arith.constant 0 : index
    %61 = vector.load %arg6[%c1_45, %c0_46, %c0_47] : memref<6x72x72xf32, #tpu.memory_space<vmem>>, vector<1x72x72xf32>
    %62 = vector.shape_cast %61 : vector<1x72x72xf32> to vector<72x72xf32>
    %63 = vector.extract_strided_slice %62 {offsets = [0, 0], sizes = [48, 24], strides = [1, 1]} : vector<72x72xf32> to vector<48x24xf32>
    %cst_48 = arith.constant dense<0.000000e+00> : vector<8x24xf32>
    %64 = tpu.matmul %60, %63, %cst_48 {dimension_numbers = #tpu.dot_dimension_numbers<[1], [0], [0], [1], [0, 0, 1, 1], [], []>} : vector<8x48xf32>, vector<48x24xf32>, vector<8x24xf32> -> vector<8x24xf32>
    %c3_49 = arith.constant 3 : index
    %c0_50 = arith.constant 0 : index
    %c0_51 = arith.constant 0 : index
    %65 = vector.load %arg7[%c3_49, %c0_50, %c0_51] : memref<10x1x576xf32, #tpu.memory_space<vmem>>, vector<1x1x576xf32>
    %66 = vector.shape_cast %65 : vector<1x1x576xf32> to vector<1x576xf32>
    %67 = vector.extract_strided_slice %66 {offsets = [0, 0], sizes = [1, 24], strides = [1, 1]} : vector<1x576xf32> to vector<1x24xf32>
    %68 = vector.broadcast %67 : vector<1x24xf32> to vector<8x24xf32>
    %69 = arith.addf %64, %68 : vector<8x24xf32>
    %cst_52 = arith.constant 5.000000e-01 : f32
    %70 = vector.broadcast %cst_52 : f32 to vector<8x24xf32>
    %71 = arith.cmpf oge, %69, %70 : vector<8x24xf32>
    %72 = arith.extui %71 : vector<8x24xi1> to vector<8x24xi32>
    %73 = arith.sitofp %72 : vector<8x24xi32> to vector<8x24xf32>
    %c2_53 = arith.constant 2 : index
    %c0_54 = arith.constant 0 : index
    %c0_55 = arith.constant 0 : index
    %74 = vector.load %arg6[%c2_53, %c0_54, %c0_55] : memref<6x72x72xf32, #tpu.memory_space<vmem>>, vector<1x72x72xf32>
    %75 = vector.shape_cast %74 : vector<1x72x72xf32> to vector<72x72xf32>
    %76 = vector.extract_strided_slice %75 {offsets = [0, 0], sizes = [24, 16], strides = [1, 1]} : vector<72x72xf32> to vector<24x16xf32>
    %cst_56 = arith.constant dense<0.000000e+00> : vector<8x16xf32>
    %77 = tpu.matmul %73, %76, %cst_56 {dimension_numbers = #tpu.dot_dimension_numbers<[1], [0], [0], [1], [0, 0, 1, 1], [], []>} : vector<8x24xf32>, vector<24x16xf32>, vector<8x16xf32> -> vector<8x16xf32>
    %c4 = arith.constant 4 : index
    %c0_57 = arith.constant 0 : index
    %c0_58 = arith.constant 0 : index
    %78 = vector.load %arg7[%c4, %c0_57, %c0_58] : memref<10x1x576xf32, #tpu.memory_space<vmem>>, vector<1x1x576xf32>
    %79 = vector.shape_cast %78 : vector<1x1x576xf32> to vector<1x576xf32>
    %80 = vector.extract_strided_slice %79 {offsets = [0, 0], sizes = [1, 16], strides = [1, 1]} : vector<1x576xf32> to vector<1x16xf32>
    %81 = vector.broadcast %80 : vector<1x16xf32> to vector<8x16xf32>
    %82 = arith.addf %77, %81 : vector<8x16xf32>
    %cst_59 = arith.constant 5.000000e-01 : f32
    %83 = vector.broadcast %cst_59 : f32 to vector<8x16xf32>
    %84 = arith.cmpf oge, %82, %83 : vector<8x16xf32>
    %85 = arith.extui %84 : vector<8x16xi1> to vector<8x16xi32>
    %86 = arith.sitofp %85 : vector<8x16xi32> to vector<8x16xf32>
    %cst_60 = arith.constant 1.000000e+00 : f32
    %87 = vector.broadcast %cst_60 : f32 to vector<8x16xf32>
    %88 = arith.minimumf %86, %87 : vector<8x16xf32>
    %c0_61 = arith.constant 0 : index
    %c0_62 = arith.constant 0 : index
    %89 = vector.load %arg9[%c0_61, %c0_62] : memref<8x16xf32, #tpu.memory_space<vmem>>, vector<8x16xf32>
    tpu.vector_store %arg9[%c0_61, %c0_62], %88 {strides = array<i32>} : memref<8x16xf32, #tpu.memory_space<vmem>>, vector<8x16xf32>,
    %c3_63 = arith.constant 3 : index
    %c0_64 = arith.constant 0 : index
    %c0_65 = arith.constant 0 : index
    %90 = vector.load %arg6[%c3_63, %c0_64, %c0_65] : memref<6x72x72xf32, #tpu.memory_space<vmem>>, vector<1x72x72xf32>
    %91 = vector.shape_cast %90 : vector<1x72x72xf32> to vector<72x72xf32>
    %92 = vector.extract_strided_slice %91 {offsets = [0, 0], sizes = [16, 24], strides = [1, 1]} : vector<72x72xf32> to vector<16x24xf32>
    %cst_66 = arith.constant dense<0.000000e+00> : vector<8x24xf32>
    %93 = tpu.matmul %88, %92, %cst_66 {dimension_numbers = #tpu.dot_dimension_numbers<[1], [0], [0], [1], [0, 0, 1, 1], [], []>} : vector<8x16xf32>, vector<16x24xf32>, vector<8x24xf32> -> vector<8x24xf32>
    %c5 = arith.constant 5 : index
    %c0_67 = arith.constant 0 : index
    %c0_68 = arith.constant 0 : index
    %94 = vector.load %arg7[%c5, %c0_67, %c0_68] : memref<10x1x576xf32, #tpu.memory_space<vmem>>, vector<1x1x576xf32>
    %95 = vector.shape_cast %94 : vector<1x1x576xf32> to vector<1x576xf32>
    %96 = vector.extract_strided_slice %95 {offsets = [0, 0], sizes = [1, 24], strides = [1, 1]} : vector<1x576xf32> to vector<1x24xf32>
    %97 = vector.broadcast %96 : vector<1x24xf32> to vector<8x24xf32>
    %98 = arith.addf %93, %97 : vector<8x24xf32>
    %cst_69 = arith.constant 0.000000e+00 : f32
    %cst_70 = arith.constant 1.000000e+00 : f32
    %99 = vector.broadcast %cst_69 : f32 to vector<8x24xf32>
    %100 = arith.maximumf %99, %98 : vector<8x24xf32>
    %101 = vector.broadcast %cst_70 : f32 to vector<8x24xf32>
    %102 = arith.minimumf %101, %100 : vector<8x24xf32>
    %cst_71 = arith.constant 2.550000e+02 : f32
    %103 = vector.broadcast %cst_71 : f32 to vector<8x24xf32>
    %104 = arith.mulf %102, %103 : vector<8x24xf32>
    %cst_72 = arith.constant 5.000000e-01 : f32
    %105 = vector.broadcast %cst_72 : f32 to vector<8x24xf32>
    %106 = arith.addf %104, %105 : vector<8x24xf32>
    %107 = math.floor %106 : vector<8x24xf32>
    %cst_73 = arith.constant 0.00392156886 : f32
    %108 = vector.broadcast %cst_73 : f32 to vector<8x24xf32>
    %109 = arith.mulf %107, %108 : vector<8x24xf32>
    %c4_74 = arith.constant 4 : index
    %c0_75 = arith.constant 0 : index
    %c0_76 = arith.constant 0 : index
    %110 = vector.load %arg6[%c4_74, %c0_75, %c0_76] : memref<6x72x72xf32, #tpu.memory_space<vmem>>, vector<1x72x72xf32>
    %111 = vector.shape_cast %110 : vector<1x72x72xf32> to vector<72x72xf32>
    %112 = vector.extract_strided_slice %111 {offsets = [0, 0], sizes = [24, 48], strides = [1, 1]} : vector<72x72xf32> to vector<24x48xf32>
    %cst_77 = arith.constant dense<0.000000e+00> : vector<8x48xf32>
    %113 = tpu.matmul %109, %112, %cst_77 {dimension_numbers = #tpu.dot_dimension_numbers<[1], [0], [0], [1], [0, 0, 1, 1], [], []>} : vector<8x24xf32>, vector<24x48xf32>, vector<8x48xf32> -> vector<8x48xf32>
    %c6 = arith.constant 6 : index
    %c0_78 = arith.constant 0 : index
    %c0_79 = arith.constant 0 : index
    %114 = vector.load %arg7[%c6, %c0_78, %c0_79] : memref<10x1x576xf32, #tpu.memory_space<vmem>>, vector<1x1x576xf32>
    %115 = vector.shape_cast %114 : vector<1x1x576xf32> to vector<1x576xf32>
    %116 = vector.extract_strided_slice %115 {offsets = [0, 0], sizes = [1, 48], strides = [1, 1]} : vector<1x576xf32> to vector<1x48xf32>
    %117 = vector.broadcast %116 : vector<1x48xf32> to vector<8x48xf32>
    %118 = arith.addf %113, %117 : vector<8x48xf32>
    %cst_80 = arith.constant 0.000000e+00 : f32
    %cst_81 = arith.constant 1.000000e+00 : f32
    %119 = vector.broadcast %cst_80 : f32 to vector<8x48xf32>
    %120 = arith.maximumf %119, %118 : vector<8x48xf32>
    %121 = vector.broadcast %cst_81 : f32 to vector<8x48xf32>
    %122 = arith.minimumf %121, %120 : vector<8x48xf32>
    %cst_82 = arith.constant 2.550000e+02 : f32
    %123 = vector.broadcast %cst_82 : f32 to vector<8x48xf32>
    %124 = arith.mulf %122, %123 : vector<8x48xf32>
    %cst_83 = arith.constant 5.000000e-01 : f32
    %125 = vector.broadcast %cst_83 : f32 to vector<8x48xf32>
    %126 = arith.addf %124, %125 : vector<8x48xf32>
    %127 = math.floor %126 : vector<8x48xf32>
    %cst_84 = arith.constant 0.00392156886 : f32
    %128 = vector.broadcast %cst_84 : f32 to vector<8x48xf32>
    %129 = arith.mulf %127, %128 : vector<8x48xf32>
    %c5_85 = arith.constant 5 : index
    %c0_86 = arith.constant 0 : index
    %c0_87 = arith.constant 0 : index
    %130 = vector.load %arg6[%c5_85, %c0_86, %c0_87] : memref<6x72x72xf32, #tpu.memory_space<vmem>>, vector<1x72x72xf32>
    %131 = vector.shape_cast %130 : vector<1x72x72xf32> to vector<72x72xf32>
    %132 = vector.extract_strided_slice %131 {offsets = [0, 0], sizes = [48, 72], strides = [1, 1]} : vector<72x72xf32> to vector<48x72xf32>
    %cst_88 = arith.constant dense<0.000000e+00> : vector<8x72xf32>
    %133 = tpu.matmul %129, %132, %cst_88 {dimension_numbers = #tpu.dot_dimension_numbers<[1], [0], [0], [1], [0, 0, 1, 1], [], []>} : vector<8x48xf32>, vector<48x72xf32>, vector<8x72xf32> -> vector<8x72xf32>
    %c7 = arith.constant 7 : index
    %c0_89 = arith.constant 0 : index
    %c0_90 = arith.constant 0 : index
    %134 = vector.load %arg7[%c7, %c0_89, %c0_90] : memref<10x1x576xf32, #tpu.memory_space<vmem>>, vector<1x1x576xf32>
    %135 = vector.shape_cast %134 : vector<1x1x576xf32> to vector<1x576xf32>
    %136 = vector.extract_strided_slice %135 {offsets = [0, 0], sizes = [1, 72], strides = [1, 1]} : vector<1x576xf32> to vector<1x72xf32>
    %137 = vector.broadcast %136 : vector<1x72xf32> to vector<8x72xf32>
    %138 = arith.addf %133, %137 : vector<8x72xf32>
    %cst_91 = arith.constant 0.000000e+00 : f32
    %cst_92 = arith.constant 1.000000e+00 : f32
    %139 = vector.broadcast %cst_91 : f32 to vector<8x72xf32>
    %140 = arith.maximumf %139, %138 : vector<8x72xf32>
    %141 = vector.broadcast %cst_92 : f32 to vector<8x72xf32>
    %142 = arith.minimumf %141, %140 : vector<8x72xf32>
    %cst_93 = arith.constant 2.550000e+02 : f32
    %143 = vector.broadcast %cst_93 : f32 to vector<8x72xf32>
    %144 = arith.mulf %142, %143 : vector<8x72xf32>
    %cst_94 = arith.constant 5.000000e-01 : f32
    %145 = vector.broadcast %cst_94 : f32 to vector<8x72xf32>
    %146 = arith.addf %144, %145 : vector<8x72xf32>
    %147 = math.floor %146 : vector<8x72xf32>
    %cst_95 = arith.constant 0.00392156886 : f32
    %148 = vector.broadcast %cst_95 : f32 to vector<8x72xf32>
    %149 = arith.mulf %147, %148 : vector<8x72xf32>
    %c0_96 = arith.constant 0 : index
    %c0_97 = arith.constant 0 : index
    %150 = vector.load %arg4[%c0_96, %c0_97] : memref<72x576xf32, #tpu.memory_space<vmem>>, vector<72x576xf32>
    %cst_98 = arith.constant dense<0.000000e+00> : vector<8x576xf32>
    %151 = tpu.matmul %149, %150, %cst_98 {dimension_numbers = #tpu.dot_dimension_numbers<[1], [0], [0], [1], [0, 0, 1, 1], [], []>} : vector<8x72xf32>, vector<72x576xf32>, vector<8x576xf32> -> vector<8x576xf32>
    %c8 = arith.constant 8 : index
    %c0_99 = arith.constant 0 : index
    %c0_100 = arith.constant 0 : index
    %152 = vector.load %arg7[%c8, %c0_99, %c0_100] : memref<10x1x576xf32, #tpu.memory_space<vmem>>, vector<1x1x576xf32>
    %153 = vector.shape_cast %152 : vector<1x1x576xf32> to vector<1x576xf32>
    %154 = vector.broadcast %153 : vector<1x576xf32> to vector<8x576xf32>
    %155 = arith.addf %151, %154 : vector<8x576xf32>
    %cst_101 = arith.constant 0.000000e+00 : f32
    %cst_102 = arith.constant 1.000000e+00 : f32
    %156 = vector.broadcast %cst_101 : f32 to vector<8x576xf32>
    %157 = arith.maximumf %156, %155 : vector<8x576xf32>
    %158 = vector.broadcast %cst_102 : f32 to vector<8x576xf32>
    %159 = arith.minimumf %158, %157 : vector<8x576xf32>
    %cst_103 = arith.constant 2.550000e+02 : f32
    %160 = vector.broadcast %cst_103 : f32 to vector<8x576xf32>
    %161 = arith.mulf %159, %160 : vector<8x576xf32>
    %cst_104 = arith.constant 5.000000e-01 : f32
    %162 = vector.broadcast %cst_104 : f32 to vector<8x576xf32>
    %163 = arith.addf %161, %162 : vector<8x576xf32>
    %164 = math.floor %163 : vector<8x576xf32>
    %cst_105 = arith.constant 0.00392156886 : f32
    %165 = vector.broadcast %cst_105 : f32 to vector<8x576xf32>
    %166 = arith.mulf %164, %165 : vector<8x576xf32>
    %c0_106 = arith.constant 0 : index
    %c0_107 = arith.constant 0 : index
    %167 = vector.load %arg5[%c0_106, %c0_107] : memref<576x48xf32, #tpu.memory_space<vmem>>, vector<576x48xf32>
    %cst_108 = arith.constant dense<0.000000e+00> : vector<8x48xf32>
    %168 = tpu.matmul %166, %167, %cst_108 {dimension_numbers = #tpu.dot_dimension_numbers<[1], [0], [0], [1], [0, 0, 1, 1], [], []>} : vector<8x576xf32>, vector<576x48xf32>, vector<8x48xf32> -> vector<8x48xf32>
    %c9 = arith.constant 9 : index
    %c0_109 = arith.constant 0 : index
    %c0_110 = arith.constant 0 : index
    %169 = vector.load %arg7[%c9, %c0_109, %c0_110] : memref<10x1x576xf32, #tpu.memory_space<vmem>>, vector<1x1x576xf32>
    %170 = vector.shape_cast %169 : vector<1x1x576xf32> to vector<1x576xf32>
    %171 = vector.extract_strided_slice %170 {offsets = [0, 0], sizes = [1, 48], strides = [1, 1]} : vector<1x576xf32> to vector<1x48xf32>
    %172 = vector.broadcast %171 : vector<1x48xf32> to vector<8x48xf32>
    %173 = arith.addf %168, %172 : vector<8x48xf32>
    %cst_111 = arith.constant 5.000000e-01 : f32
    %174 = vector.broadcast %cst_111 : f32 to vector<8x48xf32>
    %175 = arith.mulf %174, %173 : vector<8x48xf32>
    %176 = math.tanh %175 : vector<8x48xf32>
    %cst_112 = arith.constant 1.000000e+00 : f32
    %177 = vector.broadcast %cst_112 : f32 to vector<8x48xf32>
    %178 = arith.addf %176, %177 : vector<8x48xf32>
    %cst_113 = arith.constant 5.000000e-01 : f32
    %179 = vector.broadcast %cst_113 : f32 to vector<8x48xf32>
    %180 = arith.mulf %179, %178 : vector<8x48xf32>
    %c0_114 = arith.constant 0 : index
    %c0_115 = arith.constant 0 : index
    %181 = vector.load %arg8[%c0_114, %c0_115] : memref<8x48xf32, #tpu.memory_space<vmem>>, vector<8x48xf32>
    tpu.vector_store %arg8[%c0_114, %c0_115], %180 {strides = array<i32>} : memref<8x48xf32, #tpu.memory_space<vmem>>, vector<8x48xf32>,
    return
  }
  func.func @transform_0(%arg0: i32) -> (i32, i32) {
    %c0_i32 = arith.constant 0 : i32
    %c0_i32_0 = arith.constant 0 : i32
    return %arg0, %c0_i32 : i32, i32
  }
  func.func @transform_1(%arg0: i32) -> (i32, i32, i32) {
    %c0_i32 = arith.constant 0 : i32
    %c0_i32_0 = arith.constant 0 : i32
    %c0_i32_1 = arith.constant 0 : i32
    %c0_i32_2 = arith.constant 0 : i32
    return %c0_i32, %c0_i32_0, %c0_i32_1 : i32, i32, i32
  }
  func.func @transform_2(%arg0: i32) -> (i32, i32, i32) {
    %c0_i32 = arith.constant 0 : i32
    %c0_i32_0 = arith.constant 0 : i32
    %c0_i32_1 = arith.constant 0 : i32
    %c0_i32_2 = arith.constant 0 : i32
    return %c0_i32, %c0_i32_0, %c0_i32_1 : i32, i32, i32
  }
  func.func @transform_3(%arg0: i32) -> (i32, i32) {
    %c0_i32 = arith.constant 0 : i32
    %c0_i32_0 = arith.constant 0 : i32
    %c0_i32_1 = arith.constant 0 : i32
    return %c0_i32, %c0_i32_0 : i32, i32
  }
  func.func @transform_4(%arg0: i32) -> (i32, i32) {
    %c0_i32 = arith.constant 0 : i32
    %c0_i32_0 = arith.constant 0 : i32
    %c0_i32_1 = arith.constant 0 : i32
    return %c0_i32, %c0_i32_0 : i32, i32
  }
  func.func @transform_5(%arg0: i32) -> (i32, i32, i32) {
    %c0_i32 = arith.constant 0 : i32
    %c0_i32_0 = arith.constant 0 : i32
    %c0_i32_1 = arith.constant 0 : i32
    %c0_i32_2 = arith.constant 0 : i32
    return %c0_i32, %c0_i32_0, %c0_i32_1 : i32, i32, i32
  }
  func.func @transform_6(%arg0: i32) -> (i32, i32, i32) {
    %c0_i32 = arith.constant 0 : i32
    %c0_i32_0 = arith.constant 0 : i32
    %c0_i32_1 = arith.constant 0 : i32
    %c0_i32_2 = arith.constant 0 : i32
    return %c0_i32, %c0_i32_0, %c0_i32_1 : i32, i32, i32
  }
  func.func @transform_7(%arg0: i32) -> (i32, i32) {
    %c0_i32 = arith.constant 0 : i32
    %c0_i32_0 = arith.constant 0 : i32
    return %arg0, %c0_i32 : i32, i32
  }
  func.func @transform_8(%arg0: i32) -> (i32, i32) {
    %c0_i32 = arith.constant 0 : i32
    %c0_i32_0 = arith.constant 0 : i32
    return %arg0, %c0_i32 : i32, i32
  }
}

</mosaic_0001>

<bundles_post_ra>
// kernel: tpu_custom_call.1
= control target key start
LH: loop header
LB: loop body
LE: loop exit
PB: predicated region body
PF: predicated region fallthrough
CT: control target
= control target key end

     0   :  { %14 = vsyncpa [#allocation3], 0  ;;  %vm61_vm0 = vcmask 392192   ;;  %s4302_s0 = inlined_call_operand.vmem [shape: f32[8,48], index: 0, kind: input, shape index: {}]   ;;  %s4303_s1 = inlined_call_operand.vmem [shape: f32[4,48,576], index: 1, kind: input, shape index: {}]   ;;  %s4304_s2 = inlined_call_operand.vmem [shape: f32[4,576,72], index: 2, kind: input, shape index: {}]   ;;  %s4305_s3 = inlined_call_operand.vmem [shape: f32[72,576], index: 3, kind: input, shape index: {}]   ;;  %s4306_s4 = inlined_call_operand.vmem [shape: f32[576,48], index: 4, kind: input, shape index: {}]   ;;  %s4307_s5 = inlined_call_operand.vmem [shape: f32[6,72,72], index: 5, kind: input, shape index: {}]   ;;  %s4308_s6 = inlined_call_operand.vmem [shape: f32[10,1,576], index: 6, kind: input, shape index: {}]   ;;  %s4309_s7 = inlined_call_operand.hbm [shape: f32[8,48], index: 7, kind: output, shape index: {0}]   ;;  %s4310_s8 = inlined_call_operand.hbm [shape: f32[8,16], index: 8, kind: output, shape index: {1}]  }
   0x1   :  { %v56_v0 = vld [vmem:[%s4303_s1 + $0xc8] sm:$0xff]  ;;  %v57_v1 = vld [vmem:[%s4303_s1 + $0xd0] sm:$0xff]  ;;  %v58_v2 = vld [vmem:[%s4303_s1 + $0xd8] sm:$0xff] }
   0x2   :  { %75 = vmatpush.msra.mxu0 %v56_v0  ;;  %95 = vmatpush.msra.mxu1 %v57_v1  ;;  %v59_v3 = vld [vmem:[%s4303_s1 + $0xe0] sm:$0xff]  ;;  %v52_v5 = vld [vmem:[%s4303_s1 + $0xa8] sm:$0xff]  ;;  %v53_v6 = vld [vmem:[%s4303_s1 + $0xb0] sm:$0xff] }
   0x3   :  { %v51_v4 = vld [vmem:[%s4303_s1 + $0xa0] sm:$0xff]  ;;  %115 = vmatpush.msra.mxu2 %v58_v2  ;;  %135 = vmatpush.msra.mxu3 %v59_v3  ;;  %v54_v7 = vld [vmem:[%s4303_s1 + $0xb8] sm:$0xff]  ;;  %v48_v10 = vld [vmem:[%s4303_s1 + $0x88] sm:$0xff] }
   0x4   :  { %v46_v8 = vld [vmem:[%s4303_s1 + $0x78] sm:$0xff]  ;;  %76 = vmatpush.msra.mxu0 %v51_v4  ;;  %96 = vmatpush.msra.mxu1 %v52_v5  ;;  %v47_v9 = vld [vmem:[%s4303_s1 + $0x80] sm:$0xff]  ;;  %v49_v11 = vld [vmem:[%s4303_s1 + $0x90] sm:$0xff] }
   0x5   :  { %116 = vmatpush.msra.mxu2 %v53_v6  ;;  %136 = vmatpush.msra.mxu3 %v54_v7  ;;  %v41_v12 = vld [vmem:[%s4303_s1 + $0x50] sm:$0xff]  ;;  %v42_v13 = vld [vmem:[%s4303_s1 + $0x58] sm:$0xff]  ;;  %v43_v14 = vld [vmem:[%s4303_s1 + $0x60] sm:$0xff] }
   0x6   :  { %77 = vmatpush.msra.mxu0 %v46_v8  ;;  %97 = vmatpush.msra.mxu1 %v47_v9  ;;  %v44_v15 = vld [vmem:[%s4303_s1 + $0x68] sm:$0xff]  ;;  %v37_v17 = vld [vmem:[%s4303_s1 + $0x30] sm:$0xff]  ;;  %v38_v18 = vld [vmem:[%s4303_s1 + $0x38] sm:$0xff] }
   0x7   :  { %117 = vmatpush.msra.mxu2 %v48_v10  ;;  %137 = vmatpush.msra.mxu3 %v49_v11  ;;  %v36_v16 = vld [vmem:[%s4303_s1 + $0x28] sm:$0xff]  ;;  %v39_v19 = vld [vmem:[%s4303_s1 + $0x40] sm:$0xff]  ;;  %v33_v22 = vld [vmem:[%s4303_s1 + $0x10] sm:$0xff] }
   0x8   :  { %78 = vmatpush.msra.mxu0 %v41_v12  ;;  %98 = vmatpush.msra.mxu1 %v42_v13  ;;  %v31_v20 = vld [vmem:[%s4303_s1] sm:$0xff]  ;;  %v32_v21 = vld [vmem:[%s4303_s1 + $0x8] sm:$0xff]  ;;  %v34_v23 = vld [vmem:[%s4303_s1 + $0x18] sm:$0xff] }
   0x9   :  { %118 = vmatpush.msra.mxu2 %v43_v14  ;;  %138 = vmatpush.msra.mxu3 %v44_v15  ;;  %v60_v24 = vld [vmem:[%s4303_s1 + $0xe8] sm:$0xff]  ;;  %v1984_v25 = vld [vmem:[%s4303_s1 + $0x1b8] sm:$0xff]  ;;  %v1985_v26 = vld [vmem:[%s4303_s1 + $0x1c0] sm:$0xff] }
   0xa   :  { %79 = vmatpush.msra.mxu0 %v36_v16  ;;  %99 = vmatpush.msra.mxu1 %v37_v17  ;;  %v1986_v27 = vld [vmem:[%s4303_s1 + $0x1c8] sm:$0xff]  ;;  %v55_v28 = vld [vmem:[%s4303_s1 + $0xc0] sm:$0xff]  ;;  %v1979_v29 = vld [vmem:[%s4303_s1 + $0x190] sm:$0xff] }
   0xb   :  { %119 = vmatpush.msra.mxu2 %v38_v18  ;;  %139 = vmatpush.msra.mxu3 %v39_v19  ;;  %v1980_v30 = vld [vmem:[%s4303_s1 + $0x198] sm:$0xff]  ;;  %v1981_v31 = vld [vmem:[%s4303_s1 + $0x1a0] sm:$0xff]  ;;  %v1974_v33 = vld [vmem:[%s4303_s1 + $0x168] sm:$0xff] }
   0xc   :  { %80 = vmatpush.msra.mxu0 %v31_v20  ;;  %100 = vmatpush.msra.mxu1 %v32_v21  ;;  %v50_v32 = vld [vmem:[%s4303_s1 + $0x98] sm:$0xff]  ;;  %v1975_v34 = vld [vmem:[%s4303_s1 + $0x170] sm:$0xff]  ;;  %v2568_v36 = vld [vmem:[%s4302_s0] sm:$0xff] }
   0xd   :  { %120 = vmatpush.msra.mxu2 %v33_v22  ;;  %140 = vmatpush.msra.mxu3 %v34_v23  ;;  %v1976_v35 = vld [vmem:[%s4303_s1 + $0x178] sm:$0xff]  ;;  %v45_v37 = vld [vmem:[%s4303_s1 + $0x70] sm:$0xff]  ;;  %v1969_v38 = vld [vmem:[%s4303_s1 + $0x140] sm:$0xff] }
   0xe   :  { %155 = vmatpush.msrb.mxu0 %v60_v24  ;;  %206 = vmatpush.msrb.mxu1 %v1984_v25  ;;  %v1970_v39 = vld [vmem:[%s4303_s1 + $0x148] sm:$0xff]  ;;  %v1971_v40 = vld [vmem:[%s4303_s1 + $0x150] sm:$0xff]  ;;  %v1964_v42 = vld [vmem:[%s4303_s1 + $0x118] sm:$0xff] }
   0xf   :  { %226 = vmatpush.msrb.mxu2 %v1985_v26  ;;  %246 = vmatpush.msrb.mxu3 %v1986_v27  ;;  %v40_v41 = vld [vmem:[%s4303_s1 + $0x48] sm:$0xff]  ;;  %v1965_v43 = vld [vmem:[%s4303_s1 + $0x120] sm:$0xff]  ;;  %v1959_v46 = vld [vmem:[%s4303_s1 + $0xf0] sm:$0xff] }
  0x10   :  { %156 = vmatpush.msrb.mxu0 %v55_v28  ;;  %207 = vmatpush.msrb.mxu1 %v1979_v29  ;;  %v1966_v44 = vld [vmem:[%s4303_s1 + $0x128] sm:$0xff]  ;;  %v35_v45 = vld [vmem:[%s4303_s1 + $0x20] sm:$0xff]  ;;  %v1960_v47 = vld [vmem:[%s4303_s1 + $0xf8] sm:$0xff] }
  0x11   :  { %227 = vmatpush.msrb.mxu2 %v1980_v30  ;;  %247 = vmatpush.msrb.mxu3 %v1981_v31  ;;  %v1961_v48 = vld [vmem:[%s4303_s1 + $0x100] sm:$0xff]  ;;  %v1987_v49 = vld [vmem:[%s4303_s1 + $0x1d0] sm:$0xff]  ;;  %v1988_v50 = vld [vmem:[%s4303_s1 + $0x1d8] sm:$0xff] }
  0x12   :  { %157 = vmatpush.msrb.mxu0 %v50_v32  ;;  %208 = vmatpush.msrb.mxu1 %v1974_v33  ;;  %v2019_v51 = vld [vmem:[%s4303_s1 + $0x2a8] sm:$0xff]  ;;  %v2020_v52 = vld [vmem:[%s4303_s1 + $0x2b0] sm:$0xff]  ;;  %v2014_v55 = vld [vmem:[%s4303_s1 + $0x280] sm:$0xff] }
  0x13   :  { %228 = vmatpush.msrb.mxu2 %v1975_v34  ;;  %248 = vmatpush.msrb.mxu3 %v1976_v35  ;;  %v1982_v53 = vld [vmem:[%s4303_s1 + $0x1a8] sm:$0xff]  ;;  %v1983_v54 = vld [vmem:[%s4303_s1 + $0x1b0] sm:$0xff]  ;;  %v1977_v57 = vld [vmem:[%s4303_s1 + $0x180] sm:$0xff] }
  0x14   :  { %1954 = vmatmul.msk.f32.vlgmr.msra.gmra.mxu0 %vm61_vm0, %v2568_v36  ;;  %1956 = vmatmul.msk.f32.vlgmr.msra.gmra.mxu2 %vm61_vm0, %v2568_v36  ;;  %v2015_v56 = vld [vmem:[%s4303_s1 + $0x288] sm:$0xff]  ;;  %v2009_v59 = vld [vmem:[%s4303_s1 + $0x258] sm:$0xff]  ;;  %v2010_v60 = vld [vmem:[%s4303_s1 + $0x260] sm:$0xff] }
  0x15   :  { %158 = vmatpush.msrb.mxu0 %v45_v37  ;;  %209 = vmatpush.msrb.mxu1 %v1969_v38  ;;  %v1978_v58 = vld [vmem:[%s4303_s1 + $0x188] sm:$0xff]  ;;  %v1972_v61 = vld [vmem:[%s4303_s1 + $0x158] sm:$0xff]  ;;  %v1973_v62 = vld [vmem:[%s4303_s1 + $0x160] sm:$0xff] }
  0x16   :  { %229 = vmatpush.msrb.mxu2 %v1970_v39  ;;  %249 = vmatpush.msrb.mxu3 %v1971_v40  ;;  %v2004_v63 = vld [vmem:[%s4303_s1 + $0x230] sm:$0xff]  ;;  %v2005_v0 = vld [vmem:[%s4303_s1 + $0x238] sm:$0xff]  ;;  %v1999_v3 = vld [vmem:[%s4303_s1 + $0x208] sm:$0xff] }
  0x17   :  { %1957 = vmatmul.msk.f32.vlgmr.msra.gmra.mxu3 %vm61_vm0, %v2568_v36  ;;  %159 = vmatpush.msrb.mxu0 %v40_v41  ;;  %v1967_v1 = vld [vmem:[%s4303_s1 + $0x130] sm:$0xff]  ;;  %v1968_v2 = vld [vmem:[%s4303_s1 + $0x138] sm:$0xff]  ;;  %v1962_v5 = vld [vmem:[%s4303_s1 + $0x108] sm:$0xff] }
  0x18   :  { %210 = vmatpush.msrb.mxu1 %v1964_v42  ;;  %230 = vmatpush.msrb.mxu2 %v1965_v43  ;;  %v2000_v4 = vld [vmem:[%s4303_s1 + $0x210] sm:$0xff]  ;;  %v1994_v7 = vld [vmem:[%s4303_s1 + $0x1e0] sm:$0xff]  ;;  %v1995_v8 = vld [vmem:[%s4303_s1 + $0x1e8] sm:$0xff] }
  0x19   :  { %250 = vmatpush.msrb.mxu3 %v1966_v44  ;;  %160 = vmatpush.msrb.mxu0 %v35_v45  ;;  %v1963_v6 = vld [vmem:[%s4303_s1 + $0x110] sm:$0xff]  ;;  %v2022_v9 = vld [vmem:[%s4303_s1 + $0x2c0] sm:$0xff]  ;;  %v2021_v10 = vld [vmem:[%s4303_s1 + $0x2b8] sm:$0xff] }
  0x1a   :  { %211 = vmatpush.msrb.mxu1 %v1959_v46  ;;  %231 = vmatpush.msrb.mxu2 %v1960_v47  ;;  %v2023_v11 = vld [vmem:[%s4303_s1 + $0x2c8] sm:$0xff]  ;;  %v2054_v12 = vld [vmem:[%s4303_s1 + $0x398] sm:$0xff]  ;;  %v2016_v14 = vld [vmem:[%s4303_s1 + $0x290] sm:$0xff] }
  0x1b   :  { %251 = vmatpush.msrb.mxu3 %v1961_v48  ;;  %1955 = vmatmul.msk.f32.vlgmr.msra.gmra.mxu1 %vm61_vm0, %v2568_v36  ;;  %v2017_v13 = vld [vmem:[%s4303_s1 + $0x298] sm:$0xff]  ;;  %v2018_v15 = vld [vmem:[%s4303_s1 + $0x2a0] sm:$0xff]  ;;  %v2049_v16 = vld [vmem:[%s4303_s1 + $0x370] sm:$0xff] }
  0x1c   :  { %266 = vmatpush.msra.mxu0 %v1987_v49  ;;  %286 = vmatpush.msra.mxu1 %v1988_v50  ;;  %v2012_v17 = vld [vmem:[%s4303_s1 + $0x270] sm:$0xff] }
  0x1d   :  { %342 = vmatpush.msra.mxu2 %v2019_v51  ;;  %362 = vmatpush.msra.mxu3 %v2020_v52 }
  0x1e   :  { %267 = vmatpush.msra.mxu0 %v1982_v53  ;;  %287 = vmatpush.msra.mxu1 %v1983_v54 }
  0x1f   :  { %343 = vmatpush.msra.mxu2 %v2014_v55  ;;  %363 = vmatpush.msra.mxu3 %v2015_v56 }
  0x20   :  { %1958 = vmatmul.msk.f32.vlgmr.msrb.gmra.mxu0 %vm61_vm0, %v2568_v36  ;;  %1990 = vmatmul.msk.f32.vlgmr.msrb.gmra.mxu2 %vm61_vm0, %v2568_v36 }
  0x21   :  { %268 = vmatpush.msra.mxu0 %v1977_v57  ;;  %288 = vmatpush.msra.mxu1 %v1978_v58 }
  0x22   :  { %344 = vmatpush.msra.mxu2 %v2009_v59  ;;  %364 = vmatpush.msra.mxu3 %v2010_v60 }
  0x23   :  { %1991 = vmatmul.msk.f32.vlgmr.msrb.gmra.mxu3 %vm61_vm0, %v2568_v36  ;;  %269 = vmatpush.msra.mxu0 %v1972_v61 }
  0x24   :  { %289 = vmatpush.msra.mxu1 %v1973_v62  ;;  %345 = vmatpush.msra.mxu2 %v2004_v63 }
  0x25   :  { %365 = vmatpush.msra.mxu3 %v2005_v0  ;;  %270 = vmatpush.msra.mxu0 %v1967_v1 }
  0x26   :  { %290 = vmatpush.msra.mxu1 %v1968_v2  ;;  %346 = vmatpush.msra.mxu2 %v1999_v3 }
  0x27   :  { %366 = vmatpush.msra.mxu3 %v2000_v4  ;;  %1989 = vmatmul.msk.f32.vlgmr.msrb.gmra.mxu1 %vm61_vm0, %v2568_v36 }
  0x28   :  { %271 = vmatpush.msra.mxu0 %v1962_v5  ;;  %291 = vmatpush.msra.mxu1 %v1963_v6 }
  0x29   :  { %347 = vmatpush.msra.mxu2 %v1994_v7  ;;  %367 = vmatpush.msra.mxu3 %v1995_v8 }
  0x2a   :  { %1992 = vmatmul.msk.f32.vlgmr.msra.gmra.mxu0 %vm61_vm0, %v2568_v36  ;;  %402 = vmatpush.msrb.mxu1 %v2022_v9 }
  0x2b   :  { %382 = vmatpush.msrb.mxu0 %v2021_v10  ;;  %422 = vmatpush.msrb.mxu2 %v2023_v11 }
  0x2c   :  { %15 = vsyncpa [#allocation5], 0  ;;  %473 = vmatpush.msrb.mxu3 %v2054_v12  ;;  %403 = vmatpush.msrb.mxu1 %v2017_v13  ;;  %v2011_v18 = vld [vmem:[%s4303_s1 + $0x268] sm:$0xff]  ;;  %v2013_v19 = vld [vmem:[%s4303_s1 + $0x278] sm:$0xff]  ;;  %vm677_vm6 = vcmask 523264   ;;  %vm1326_vm7 = vcmask 588800  }
  0x2d   :  { %383 = vmatpush.msrb.mxu0 %v2016_v14  ;;  %423 = vmatpush.msrb.mxu2 %v2018_v15  ;;  %v2044_v20 = vld [vmem:[%s4303_s1 + $0x348] sm:$0xff]  ;;  %v2006_v21 = vld [vmem:[%s4303_s1 + $0x240] sm:$0xff]  ;;  %v2008_v23 = vld [vmem:[%s4303_s1 + $0x250] sm:$0xff]  ;;  %vm1400_vm10 = vcmask 195584   ;;  %vm1428_vm13 = vcmask 130048   ;;  %s1940_s18 = sshll.u32 %s4310_s8, 4  ;;  %s1941_s18 = int_to_ptr.hbm [resolvable:$true] %s1940_s18 }
  0x2e   :  { %474 = vmatpush.msrb.mxu3 %v2049_v16  ;;  %404 = vmatpush.msrb.mxu1 %v2012_v17  ;;  %v2007_v22 = vld [vmem:[%s4303_s1 + $0x248] sm:$0xff]  ;;  %v2039_v24 = vld [vmem:[%s4303_s1 + $0x320] sm:$0xff]  ;;  %v2001_v25 = vld [vmem:[%s4303_s1 + $0x218] sm:$0xff]  ;;  %s2411_s8 = smov [#allocation2]  }
  0x2f   :  { %2025 = vmatmul.msk.f32.vlgmr.msra.gmra.mxu3 %vm61_vm0, %v2568_v36  ;;  %384 = vmatpush.msrb.mxu0 %v2011_v18  ;;  %v2002_v26 = vld [vmem:[%s4303_s1 + $0x220] sm:$0xff]  ;;  %v2003_v27 = vld [vmem:[%s4303_s1 + $0x228] sm:$0xff]  ;;  %v2034_v28 = vld [vmem:[%s4303_s1 + $0x2f8] sm:$0xff]  ;;  %s1927_s20 = sshll.u32 %s2411_s8, 4  ;;  %s1928_s20 = int_to_ptr.vmem [resolvable:$true] %s1927_s20 }
  0x30   :  { %424 = vmatpush.msrb.mxu2 %v2013_v19  ;;  %475 = vmatpush.msrb.mxu3 %v2044_v20  ;;  %v1996_v29 = vld [vmem:[%s4303_s1 + $0x1f0] sm:$0xff]  ;;  %v1997_v30 = vld [vmem:[%s4303_s1 + $0x1f8] sm:$0xff]  ;;  %v1998_v31 = vld [vmem:[%s4303_s1 + $0x200] sm:$0xff] }
  0x31   :  { %1993 = vmatmul.msk.f32.vlgmr.msra.gmra.mxu1 %vm61_vm0, %v2568_v36  ;;  %2024 = vmatmul.msk.f32.vlgmr.msra.gmra.mxu2 %vm61_vm0, %v2568_v36  ;;  %v2029_v32 = vld [vmem:[%s4303_s1 + $0x2d0] sm:$0xff]  ;;  %v2055_v33 = vld [vmem:[%s4303_s1 + $0x3a0] sm:$0xff]  ;;  %v2056_v34 = vld [vmem:[%s4303_s1 + $0x3a8] sm:$0xff] }
  0x32   :  { %385 = vmatpush.msrb.mxu0 %v2006_v21  ;;  %405 = vmatpush.msrb.mxu1 %v2007_v22  ;;  %v2057_v35 = vld [vmem:[%s4303_s1 + $0x3b0] sm:$0xff]  ;;  %v2058_v37 = vld [vmem:[%s4303_s1 + $0x3b8] sm:$0xff]  ;;  %v2051_v39 = vld [vmem:[%s4303_s1 + $0x380] sm:$0xff] }
  0x33   :  { %425 = vmatpush.msrb.mxu2 %v2008_v23  ;;  %476 = vmatpush.msrb.mxu3 %v2039_v24  ;;  %v2050_v38 = vld [vmem:[%s4303_s1 + $0x378] sm:$0xff]  ;;  %v2052_v40 = vld [vmem:[%s4303_s1 + $0x388] sm:$0xff]  ;;  %v2053_v41 = vld [vmem:[%s4303_s1 + $0x390] sm:$0xff] }
  0x34   :  { %386 = vmatpush.msrb.mxu0 %v2001_v25  ;;  %406 = vmatpush.msrb.mxu1 %v2002_v26  ;;  %v2045_v42 = vld [vmem:[%s4303_s1 + $0x350] sm:$0xff]  ;;  %v2046_v43 = vld [vmem:[%s4303_s1 + $0x358] sm:$0xff]  ;;  %v2047_v44 = vld [vmem:[%s4303_s1 + $0x360] sm:$0xff] }
  0x35   :  { %426 = vmatpush.msrb.mxu2 %v2003_v27  ;;  %477 = vmatpush.msrb.mxu3 %v2034_v28  ;;  %v2048_v45 = vld [vmem:[%s4303_s1 + $0x368] sm:$0xff]  ;;  %v2041_v47 = vld [vmem:[%s4303_s1 + $0x330] sm:$0xff]  ;;  %v2042_v48 = vld [vmem:[%s4303_s1 + $0x338] sm:$0xff] }
  0x36   :  { %387 = vmatpush.msrb.mxu0 %v1996_v29  ;;  %407 = vmatpush.msrb.mxu1 %v1997_v30  ;;  %v2040_v46 = vld [vmem:[%s4303_s1 + $0x328] sm:$0xff]  ;;  %v2043_v49 = vld [vmem:[%s4303_s1 + $0x340] sm:$0xff]  ;;  %v2037_v52 = vld [vmem:[%s4303_s1 + $0x310] sm:$0xff] }
  0x37   :  { %427 = vmatpush.msrb.mxu2 %v1998_v31  ;;  %478 = vmatpush.msrb.mxu3 %v2029_v32  ;;  %v2035_v50 = vld [vmem:[%s4303_s1 + $0x300] sm:$0xff]  ;;  %v2036_v51 = vld [vmem:[%s4303_s1 + $0x308] sm:$0xff]  ;;  %v2038_v53 = vld [vmem:[%s4303_s1 + $0x318] sm:$0xff] }
  0x38   :  { %2059 = vmatmul.msk.f32.vlgmr.msrb.gmra.mxu3 %vm61_vm0, %v2568_v36  ;;  %493 = vmatpush.msra.mxu0 %v2055_v33  ;;  %v2030_v54 = vld [vmem:[%s4303_s1 + $0x2d8] sm:$0xff]  ;;  %v2031_v55 = vld [vmem:[%s4303_s1 + $0x2e0] sm:$0xff]  ;;  %v2032_v56 = vld [vmem:[%s4303_s1 + $0x2e8] sm:$0xff] }
  0x39   :  { %513 = vmatpush.msra.mxu1 %v2056_v34  ;;  %533 = vmatpush.msra.mxu2 %v2057_v35  ;;  %v2033_v57 = vld [vmem:[%s4303_s1 + $0x2f0] sm:$0xff]  ;;  %v636_v58 = vld [vmem:[%s4304_s2 + $0xf8] sm:$0xff]  ;;  %v650_v2 = vld [vmem:[%s4304_s2 + $0x168] sm:$0xff] }
  0x3a   :  { %553 = vmatpush.msra.mxu3 %v2058_v37  ;;  %494 = vmatpush.msra.mxu0 %v2050_v38  ;;  %v652_v59 = vld [vmem:[%s4304_s2 + $0x178] sm:$0xff]  ;;  %v635_v62 = vld [vmem:[%s4304_s2 + $0xf0] sm:$0xff]  ;;  %v666_v3 = vld [vmem:[%s4304_s2 + $0x1e8] sm:$0xff] }
  0x3b   :  { %514 = vmatpush.msra.mxu1 %v2051_v39  ;;  %534 = vmatpush.msra.mxu2 %v2052_v40  ;;  %v668_v60 = vld [vmem:[%s4304_s2 + $0x1f8] sm:$0xff]  ;;  %v651_v63 = vld [vmem:[%s4304_s2 + $0x170] sm:$0xff]  ;;  %v618_v4 = vld [vmem:[%s4304_s2 + $0x68] sm:$0xff] }
  0x3c   :  { %554 = vmatpush.msra.mxu3 %v2053_v41  ;;  %2026 = vmatmul.msk.f32.vlgmr.msrb.gmra.mxu0 %vm61_vm0, %v2568_v36  ;;  %v620_v61 = vld [vmem:[%s4304_s2 + $0x78] sm:$0xff]  ;;  %v667_v0 = vld [vmem:[%s4304_s2 + $0x1f0] sm:$0xff]  ;;  %v633_v5 = vld [vmem:[%s4304_s2 + $0xe0] sm:$0xff] }
  0x3d   :  { %2027 = vmatmul.msk.f32.vlgmr.msrb.gmra.mxu1 %vm61_vm0, %v2568_v36  ;;  %2028 = vmatmul.msk.f32.vlgmr.msrb.gmra.mxu2 %vm61_vm0, %v2568_v36  ;;  %v619_v1 = vld [vmem:[%s4304_s2 + $0x70] sm:$0xff]  ;;  %v649_v6 = vld [vmem:[%s4304_s2 + $0x160] sm:$0xff]  ;;  %v632_v8 = vld [vmem:[%s4304_s2 + $0xd8] sm:$0xff] }
  0x3e   :  { %495 = vmatpush.msra.mxu0 %v2045_v42  ;;  %515 = vmatpush.msra.mxu1 %v2046_v43  ;;  %v665_v7 = vld [vmem:[%s4304_s2 + $0x1e0] sm:$0xff]  ;;  %v648_v9 = vld [vmem:[%s4304_s2 + $0x158] sm:$0xff]  ;;  %v631_v11 = vld [vmem:[%s4304_s2 + $0xd0] sm:$0xff] }
  0x3f   :  { %535 = vmatpush.msra.mxu2 %v2047_v44  ;;  %555 = vmatpush.msra.mxu3 %v2048_v45  ;;  %v664_v10 = vld [vmem:[%s4304_s2 + $0x1d8] sm:$0xff]  ;;  %v647_v12 = vld [vmem:[%s4304_s2 + $0x150] sm:$0xff]  ;;  %v630_v13 = vld [vmem:[%s4304_s2 + $0xc8] sm:$0xff] }
  0x40   :  { %496 = vmatpush.msra.mxu0 %v2040_v46  ;;  %516 = vmatpush.msra.mxu1 %v2041_v47  ;;  %v646_v14 = vld [vmem:[%s4304_s2 + $0x148] sm:$0xff]  ;;  %v629_v15 = vld [vmem:[%s4304_s2 + $0xc0] sm:$0xff]  ;;  %v628_v17 = vld [vmem:[%s4304_s2 + $0xb8] sm:$0xff] }
  0x41   :  { %536 = vmatpush.msra.mxu2 %v2042_v48  ;;  %556 = vmatpush.msra.mxu3 %v2043_v49  ;;  %v645_v16 = vld [vmem:[%s4304_s2 + $0x140] sm:$0xff]  ;;  %v644_v18 = vld [vmem:[%s4304_s2 + $0x138] sm:$0xff]  ;;  %v663_v19 = vld [vmem:[%s4304_s2 + $0x1d0] sm:$0xff] }
  0x42   :  { %497 = vmatpush.msra.mxu0 %v2035_v50  ;;  %517 = vmatpush.msra.mxu1 %v2036_v51  ;;  %v617_v20 = vld [vmem:[%s4304_s2 + $0x60] sm:$0xff]  ;;  %v627_v21 = vld [vmem:[%s4304_s2 + $0xb0] sm:$0xff]  ;;  %v662_v23 = vld [vmem:[%s4304_s2 + $0x1c8] sm:$0xff] }
  0x43   :  { %537 = vmatpush.msra.mxu2 %v2037_v52  ;;  %557 = vmatpush.msra.mxu3 %v2038_v53  ;;  %v643_v22 = vld [vmem:[%s4304_s2 + $0x130] sm:$0xff]  ;;  %v616_v24 = vld [vmem:[%s4304_s2 + $0x58] sm:$0xff]  ;;  %v626_v25 = vld [vmem:[%s4304_s2 + $0xa8] sm:$0xff] }
  0x44   :  { %498 = vmatpush.msra.mxu0 %v2030_v54  ;;  %518 = vmatpush.msra.mxu1 %v2031_v55  ;;  %v642_v26 = vld [vmem:[%s4304_s2 + $0x128] sm:$0xff]  ;;  %v661_v27 = vld [vmem:[%s4304_s2 + $0x1c0] sm:$0xff]  ;;  %v615_v28 = vld [vmem:[%s4304_s2 + $0x50] sm:$0xff] }
  0x45   :  { %538 = vmatpush.msra.mxu2 %v2032_v56  ;;  %558 = vmatpush.msra.mxu3 %v2033_v57  ;;  %v625_v29 = vld [vmem:[%s4304_s2 + $0xa0] sm:$0xff]  ;;  %v660_v31 = vld [vmem:[%s4304_s2 + $0x1b8] sm:$0xff]  ;;  %v614_v32 = vld [vmem:[%s4304_s2 + $0x48] sm:$0xff] }
  0x46   :  { %2060 = vmatmul.msk.f32.vlgmr.msra.gmra.mxu0 %vm61_vm0, %v2568_v36  ;;  %2061 = vmatmul.msk.f32.vlgmr.msra.gmra.mxu1 %vm61_vm0, %v2568_v36  ;;  %v641_v30 = vld [vmem:[%s4304_s2 + $0x120] sm:$0xff]  ;;  %v624_v33 = vld [vmem:[%s4304_s2 + $0x98] sm:$0xff]  ;;  %v659_v35 = vld [vmem:[%s4304_s2 + $0x1b0] sm:$0xff] }
  0x47   :  { %2062 = vmatmul.msk.f32.vlgmr.msra.gmra.mxu2 %vm61_vm0, %v2568_v36  ;;  %2063 = vmatmul.msk.f32.vlgmr.msra.gmra.mxu3 %vm61_vm0, %v2568_v36  ;;  %v634_v36 = vld [vmem:[%s4304_s2 + $0xe8] sm:$0xff]  ;;  %v640_v34 = vld [vmem:[%s4304_s2 + $0x118] sm:$0xff]  ;;  %v613_v37 = vld [vmem:[%s4304_s2 + $0x40] sm:$0xff] }
  0x48   :  { %701 = vmatpush.msrb.mxu1 %v636_v58  ;;  %721 = vmatpush.msrb.mxu2 %v652_v59  ;;  %v623_v38 = vld [vmem:[%s4304_s2 + $0x90] sm:$0xff]  ;;  %v658_v40 = vld [vmem:[%s4304_s2 + $0x1a8] sm:$0xff]  ;;  %v612_v41 = vld [vmem:[%s4304_s2 + $0x38] sm:$0xff] }
  0x49   :  { %741 = vmatpush.msrb.mxu3 %v668_v60  ;;  %681 = vmatpush.msrb.mxu0 %v620_v61  ;;  %v639_v39 = vld [vmem:[%s4304_s2 + $0x110] sm:$0xff]  ;;  %v622_v42 = vld [vmem:[%s4304_s2 + $0x88] sm:$0xff]  ;;  %v657_v44 = vld [vmem:[%s4304_s2 + $0x1a0] sm:$0xff] }
  0x4a   :  { %702 = vmatpush.msrb.mxu1 %v635_v62  ;;  %722 = vmatpush.msrb.mxu2 %v651_v63  ;;  %v638_v43 = vld [vmem:[%s4304_s2 + $0x108] sm:$0xff]  ;;  %v611_v45 = vld [vmem:[%s4304_s2 + $0x30] sm:$0xff]  ;;  %v621_v46 = vld [vmem:[%s4304_s2 + $0x80] sm:$0xff] }
  0x4b   :  { %742 = vmatpush.msrb.mxu3 %v667_v0  ;;  %682 = vmatpush.msrb.mxu0 %v619_v1  ;;  %v637_v47 = vld [vmem:[%s4304_s2 + $0x100] sm:$0xff]  ;;  %v656_v48 = vld [vmem:[%s4304_s2 + $0x198] sm:$0xff]  ;;  %v610_v49 = vld [vmem:[%s4304_s2 + $0x28] sm:$0xff] }
  0x4c   :  { %703 = vmatpush.msrb.mxu1 %v634_v36  ;;  %723 = vmatpush.msrb.mxu2 %v650_v2  ;;  %v2089_v50 = vld [vmem:[%s4304_s2 + $0x2b8] sm:$0xff]  ;;  %v655_v52 = vld [vmem:[%s4304_s2 + $0x190] sm:$0xff]  ;;  %v609_v53 = vld [vmem:[%s4304_s2 + $0x20] sm:$0xff] }
  0x4d   :  { %743 = vmatpush.msrb.mxu3 %v666_v3  ;;  %683 = vmatpush.msrb.mxu0 %v618_v4  ;;  %v2105_v51 = vld [vmem:[%s4304_s2 + $0x338] sm:$0xff]  ;;  %v2088_v54 = vld [vmem:[%s4304_s2 + $0x2b0] sm:$0xff]  ;;  %v654_v56 = vld [vmem:[%s4304_s2 + $0x188] sm:$0xff] }
  0x4e   :  { %704 = vmatpush.msrb.mxu1 %v633_v5  ;;  %724 = vmatpush.msrb.mxu2 %v649_v6  ;;  %v2104_v55 = vld [vmem:[%s4304_s2 + $0x330] sm:$0xff]  ;;  %v608_v57 = vld [vmem:[%s4304_s2 + $0x18] sm:$0xff]  ;;  %v2087_v58 = vld [vmem:[%s4304_s2 + $0x2a8] sm:$0xff] }
  0x4f   :  { %744 = vmatpush.msrb.mxu3 %v665_v7  ;;  %684 = vmatpush.msrb.mxu0 %v617_v20  ;;  %v2103_v59 = vld [vmem:[%s4304_s2 + $0x328] sm:$0xff]  ;;  %v653_v60 = vld [vmem:[%s4304_s2 + $0x180] sm:$0xff]  ;;  %v607_v61 = vld [vmem:[%s4304_s2 + $0x10] sm:$0xff] }
  0x50   :  { %705 = vmatpush.msrb.mxu1 %v632_v8  ;;  %725 = vmatpush.msrb.mxu2 %v648_v9  ;;  %v2086_v62 = vld [vmem:[%s4304_s2 + $0x2a0] sm:$0xff]  ;;  %v2121_v0 = vld [vmem:[%s4304_s2 + $0x3b8] sm:$0xff]  ;;  %v606_v1 = vld [vmem:[%s4304_s2 + $0x8] sm:$0xff] }
  0x51   :  { %745 = vmatpush.msrb.mxu3 %v664_v10  ;;  %685 = vmatpush.msrb.mxu0 %v616_v24  ;;  %v2102_v63 = vld [vmem:[%s4304_s2 + $0x320] sm:$0xff]  ;;  %v2085_v36 = vld [vmem:[%s4304_s2 + $0x298] sm:$0xff]  ;;  %v2120_v3 = vld [vmem:[%s4304_s2 + $0x3b0] sm:$0xff] }
  0x52   :  { %706 = vmatpush.msrb.mxu1 %v631_v11  ;;  %726 = vmatpush.msrb.mxu2 %v647_v12  ;;  %v2101_v2 = vld [vmem:[%s4304_s2 + $0x318] sm:$0xff]  ;;  %v605_v4 = vld [vmem:[%s4304_s2] sm:$0xff]  ;;  %v2084_v5 = vld [vmem:[%s4304_s2 + $0x290] sm:$0xff] }
  0x53   :  { %746 = vmatpush.msrb.mxu3 %v663_v19  ;;  %686 = vmatpush.msrb.mxu0 %v615_v28  ;;  %v2100_v6 = vld [vmem:[%s4304_s2 + $0x310] sm:$0xff]  ;;  %v2119_v7 = vld [vmem:[%s4304_s2 + $0x3a8] sm:$0xff]  ;;  %v676_v8 = vld [vmem:[%s4304_s2 + $0x238] sm:$0xff] }
  0x54   :  { %707 = vmatpush.msrb.mxu1 %v630_v13  ;;  %727 = vmatpush.msrb.mxu2 %v646_v14  ;;  %v2083_v9 = vld [vmem:[%s4304_s2 + $0x288] sm:$0xff]  ;;  %v2118_v11 = vld [vmem:[%s4304_s2 + $0x3a0] sm:$0xff]  ;;  %v675_v12 = vld [vmem:[%s4304_s2 + $0x230] sm:$0xff] }
  0x55   :  { %747 = vmatpush.msrb.mxu3 %v662_v23  ;;  %687 = vmatpush.msrb.mxu0 %v614_v32  ;;  %v2099_v10 = vld [vmem:[%s4304_s2 + $0x308] sm:$0xff]  ;;  %v2082_v13 = vld [vmem:[%s4304_s2 + $0x280] sm:$0xff]  ;;  %v2116_v19 = vld [vmem:[%s4304_s2 + $0x390] sm:$0xff] }
  0x56   :  { %708 = vmatpush.msrb.mxu1 %v629_v15  ;;  %728 = vmatpush.msrb.mxu2 %v645_v16  ;;  %v2098_v14 = vld [vmem:[%s4304_s2 + $0x300] sm:$0xff]  ;;  %v2117_v15 = vld [vmem:[%s4304_s2 + $0x398] sm:$0xff]  ;;  %v674_v16 = vld [vmem:[%s4304_s2 + $0x228] sm:$0xff] }
  0x57   :  { %748 = vmatpush.msrb.mxu3 %v661_v27  ;;  %688 = vmatpush.msrb.mxu0 %v613_v37  ;;  %v673_v20 = vld [vmem:[%s4304_s2 + $0x220] sm:$0xff]  ;;  %v2080_v24 = vld [vmem:[%s4304_s2 + $0x270] sm:$0xff]  ;;  %v672_v27 = vld [vmem:[%s4304_s2 + $0x218] sm:$0xff] }
  0x58   :  { %709 = vmatpush.msrb.mxu1 %v628_v17  ;;  %729 = vmatpush.msrb.mxu2 %v644_v18  ;;  %v2081_v17 = vld [vmem:[%s4304_s2 + $0x278] sm:$0xff]  ;;  %v2079_v28 = vld [vmem:[%s4304_s2 + $0x268] sm:$0xff]  ;;  %v2078_v32 = vld [vmem:[%s4304_s2 + $0x260] sm:$0xff] }
  0x59   :  { %749 = vmatpush.msrb.mxu3 %v660_v31  ;;  %689 = vmatpush.msrb.mxu0 %v612_v41  ;;  %v2097_v18 = vld [vmem:[%s4304_s2 + $0x2f8] sm:$0xff]  ;;  %v671_v31 = vld [vmem:[%s4304_s2 + $0x210] sm:$0xff]  ;;  %v669_v41 = vld [vmem:[%s4304_s2 + $0x200] sm:$0xff] }
  0x5a   :  { %710 = vmatpush.msrb.mxu1 %v627_v21  ;;  %730 = vmatpush.msrb.mxu2 %v643_v22 }
  0x5b   :  { %750 = vmatpush.msrb.mxu3 %v659_v35  ;;  %690 = vmatpush.msrb.mxu0 %v611_v45  ;;  %v670_v35 = vld [vmem:[%s4304_s2 + $0x208] sm:$0xff] }
  0x5c   :  { %711 = vmatpush.msrb.mxu1 %v626_v25  ;;  %731 = vmatpush.msrb.mxu2 %v642_v26  ;;  %v2096_v25 = vld [vmem:[%s4304_s2 + $0x2f0] sm:$0xff]  ;;  %v2115_v26 = vld [vmem:[%s4304_s2 + $0x388] sm:$0xff] }
  0x5d   :  { %751 = vmatpush.msrb.mxu3 %v658_v40  ;;  %691 = vmatpush.msrb.mxu0 %v610_v49  ;;  %v2112_v40 = vld [vmem:[%s4304_s2 + $0x370] sm:$0xff]  ;;  %v2111_v45 = vld [vmem:[%s4304_s2 + $0x368] sm:$0xff] }
  0x5e   :  { %712 = vmatpush.msrb.mxu1 %v625_v29  ;;  %732 = vmatpush.msrb.mxu2 %v641_v30  ;;  %v2095_v29 = vld [vmem:[%s4304_s2 + $0x2e8] sm:$0xff]  ;;  %v2114_v30 = vld [vmem:[%s4304_s2 + $0x380] sm:$0xff] }
  0x5f   :  { %752 = vmatpush.msrb.mxu3 %v657_v44  ;;  %692 = vmatpush.msrb.mxu0 %v609_v53  ;;  %v2092_v44 = vld [vmem:[%s4304_s2 + $0x2d0] sm:$0xff]  ;;  %v2091_v49 = vld [vmem:[%s4304_s2 + $0x2c8] sm:$0xff]  ;;  %v2109_v53 = vld [vmem:[%s4304_s2 + $0x358] sm:$0xff] }
  0x60   :  { %713 = vmatpush.msrb.mxu1 %v624_v33  ;;  %733 = vmatpush.msrb.mxu2 %v640_v34  ;;  %v2094_v33 = vld [vmem:[%s4304_s2 + $0x2e0] sm:$0xff]  ;;  %v2113_v34 = vld [vmem:[%s4304_s2 + $0x378] sm:$0xff] }
  0x61   :  { %753 = vmatpush.msrb.mxu3 %v656_v48  ;;  %693 = vmatpush.msrb.mxu0 %v608_v57  ;;  %v2075_v48 = vld [vmem:[%s4304_s2 + $0x248] sm:$0xff] }
  0x62   :  { %714 = vmatpush.msrb.mxu1 %v623_v38  ;;  %734 = vmatpush.msrb.mxu2 %v639_v39  ;;  %v2077_v38 = vld [vmem:[%s4304_s2 + $0x258] sm:$0xff] }
  0x63   :  { %754 = vmatpush.msrb.mxu3 %v655_v52  ;;  %694 = vmatpush.msrb.mxu0 %v607_v61  ;;  %v2093_v39 = vld [vmem:[%s4304_s2 + $0x2d8] sm:$0xff]  ;;  %v2090_v52 = vld [vmem:[%s4304_s2 + $0x2c0] sm:$0xff] }
  0x64   :  { %715 = vmatpush.msrb.mxu1 %v622_v42  ;;  %735 = vmatpush.msrb.mxu2 %v638_v43  ;;  %v2076_v43 = vld [vmem:[%s4304_s2 + $0x250] sm:$0xff] }
  0x65   :  { %755 = vmatpush.msrb.mxu3 %v654_v56  ;;  %695 = vmatpush.msrb.mxu0 %v606_v1  ;;  %v2107_v56 = vld [vmem:[%s4304_s2 + $0x348] sm:$0xff] }
  0x66   :  { %716 = vmatpush.msrb.mxu1 %v621_v46  ;;  %736 = vmatpush.msrb.mxu2 %v637_v47 }
  0x67   :  { %756 = vmatpush.msrb.mxu3 %v653_v60  ;;  %696 = vmatpush.msrb.mxu0 %v605_v4 }
  0x68   :  { %854 = vmatpush.msra.mxu1 %v2089_v50  ;;  %874 = vmatpush.msra.mxu2 %v2105_v51  ;;  %v2110_v50 = vld [vmem:[%s4304_s2 + $0x360] sm:$0xff] }
  0x69   :  { %894 = vmatpush.msra.mxu3 %v2121_v0  ;;  %769 = vmatpush.msra.mxu0 %v676_v8  ;;  %v2074_v51 = vld [vmem:[%s4304_s2 + $0x240] sm:$0xff] }
  0x6a   :  { %855 = vmatpush.msra.mxu1 %v2088_v54  ;;  %875 = vmatpush.msra.mxu2 %v2104_v55  ;;  %v2108_v54 = vld [vmem:[%s4304_s2 + $0x350] sm:$0xff] }
  0x6b   :  { %895 = vmatpush.msra.mxu3 %v2120_v3  ;;  %770 = vmatpush.msra.mxu0 %v675_v12  ;;  %v2408_v12 = vmov 1.0  }
  0x6c   :  { %856 = vmatpush.msra.mxu1 %v2087_v58  ;;  %876 = vmatpush.msra.mxu2 %v2103_v59  ;;  %v2106_v58 = vld [vmem:[%s4304_s2 + $0x340] sm:$0xff] }
  0x6d   :  { %896 = vmatpush.msra.mxu3 %v2119_v7  ;;  %771 = vmatpush.msra.mxu0 %v674_v16  ;;  %v2137_v7 = vld [vmem:[%s4304_s2 + $0x438] sm:$0xff] }
  0x6e   :  { %857 = vmatpush.msra.mxu1 %v2086_v62  ;;  %877 = vmatpush.msra.mxu2 %v2102_v63  ;;  %v573_v63 = vld [vmem:[%s4308_s6] sm:$0x1f] }
  0x6f   :  { %897 = vmatpush.msra.mxu3 %v2118_v11  ;;  %772 = vmatpush.msra.mxu0 %v673_v20  ;;  %v575_v3 = vperm.slane %v573_v63, 0 }
  0x70   :  { %858 = vmatpush.msra.mxu1 %v2085_v36  ;;  %878 = vmatpush.msra.mxu2 %v2101_v2 }
  0x71   :  { %898 = vmatpush.msra.mxu3 %v2117_v15  ;;  %773 = vmatpush.msra.mxu0 %v672_v27 }
  0x72   :  { %859 = vmatpush.msra.mxu1 %v2084_v5  ;;  %879 = vmatpush.msra.mxu2 %v2100_v6 }
  0x73   :  { %899 = vmatpush.msra.mxu3 %v2116_v19  ;;  %774 = vmatpush.msra.mxu0 %v671_v31  ;;  %v2133_v31 = vld [vmem:[%s4304_s2 + $0x418] sm:$0xff] }
  0x74   :  { %860 = vmatpush.msra.mxu1 %v2083_v9  ;;  %880 = vmatpush.msra.mxu2 %v2099_v10  ;;  %v576_v10 = vperm.slane %v573_v63, 1 }
  0x75   :  { %900 = vmatpush.msra.mxu3 %v2115_v26  ;;  %775 = vmatpush.msra.mxu0 %v670_v35  ;;  %v2166_v26 = vld [vmem:[%s4304_s2 + $0x4f8] sm:$0xff]  ;;  %v579_v35 = vperm.slane %v573_v63, 4 }
  0x76   :  { %861 = vmatpush.msra.mxu1 %v2082_v13  ;;  %881 = vmatpush.msra.mxu2 %v2098_v14  ;;  %v2136_v13 = vld [vmem:[%s4304_s2 + $0x430] sm:$0xff] }
  0x77   :  { %901 = vmatpush.msra.mxu3 %v2114_v30  ;;  %776 = vmatpush.msra.mxu0 %v669_v41  ;;  %v2143_v41 = vld [vmem:[%s4304_s2 + $0x468] sm:$0xff] }
  0x78   :  { %862 = vmatpush.msra.mxu1 %v2081_v17  ;;  %882 = vmatpush.msra.mxu2 %v2097_v18  ;;  %v577_v17 = vperm.slane %v573_v63, 2  ;;  %v2135_v18 = vld [vmem:[%s4304_s2 + $0x428] sm:$0xff] }
  0x79   :  { %902 = vmatpush.msra.mxu3 %v2113_v34 }
  0x7a   :  { %863 = vmatpush.msra.mxu1 %v2080_v24  ;;  %883 = vmatpush.msra.mxu2 %v2096_v25  ;;  %v2145_v25 = vld [vmem:[%s4304_s2 + $0x478] sm:$0xff] }
  0x7b   :  { %903 = vmatpush.msra.mxu3 %v2112_v40 }
  0x7c   :  { %864 = vmatpush.msra.mxu1 %v2079_v28  ;;  %884 = vmatpush.msra.mxu2 %v2095_v29  ;;  %v578_v29 = vperm.slane %v573_v63, 3  ;;  %v2138_v63 = vld [vmem:[%s4304_s2 + $0x440] sm:$0xff] }
  0x7d   :  { %904 = vmatpush.msra.mxu3 %v2111_v45 }
  0x7e   :  { %865 = vmatpush.msra.mxu1 %v2078_v32  ;;  %885 = vmatpush.msra.mxu2 %v2094_v33 }
  0x7f   :  { %905 = vmatpush.msra.mxu3 %v2110_v50 }
  0x80   :  { %866 = vmatpush.msra.mxu1 %v2077_v38  ;;  %886 = vmatpush.msra.mxu2 %v2093_v39  ;;  %v2132_v38 = vld [vmem:[%s4304_s2 + $0x410] sm:$0xff] }
  0x81   :  { %906 = vmatpush.msra.mxu3 %v2109_v53  ;;  %v2181_v53 = vld [vmem:[%s4304_s2 + $0x570] sm:$0xff] }
  0x82   :  { %867 = vmatpush.msra.mxu1 %v2076_v43  ;;  %887 = vmatpush.msra.mxu2 %v2092_v44  ;;  %v2131_v43 = vld [vmem:[%s4304_s2 + $0x408] sm:$0xff] }
  0x83   :  { %907 = vmatpush.msra.mxu3 %v2108_v54  ;;  %v2130_v54 = vld [vmem:[%s4304_s2 + $0x400] sm:$0xff] }
  0x84   :  { %868 = vmatpush.msra.mxu1 %v2075_v48  ;;  %888 = vmatpush.msra.mxu2 %v2091_v49  ;;  %v2182_v48 = vld [vmem:[%s4304_s2 + $0x578] sm:$0xff]  ;;  %v2409_v49 = vmov 0.0  }
  0x85   :  { %908 = vmatpush.msra.mxu3 %v2107_v56  ;;  %v2161_v56 = vld [vmem:[%s4304_s2 + $0x4d0] sm:$0xff] }
  0x86   :  { %869 = vmatpush.msra.mxu1 %v2074_v51  ;;  %889 = vmatpush.msra.mxu2 %v2090_v52  ;;  %v2141_v51 = vld [vmem:[%s4304_s2 + $0x458] sm:$0xff] }
  0x87   :  { %909 = vmatpush.msra.mxu3 %v2106_v58  ;;  %v2162_v52 = vld [vmem:[%s4304_s2 + $0x4d8] sm:$0xff] }
  0x88   :  { %v2129_v58 = vld [vmem:[%s4304_s2 + $0x3f8] sm:$0xff] }
  0x91   :  { %v3140_v22 = vpop.f32.mrf.mxu0 }
  0x97   :  { %v3180_v37 = vpop.f32.mrf.mxu2 }
  0x98   :  { %v3138_v21 = vpop.f32.mrf.mxu1 }
  0x9a   :  { %v3142_v23 = vpop.f32.mrf.mxu3 }
  0x9d   :  { %v3203_v46 = vpop.f32.mrf.mxu0 }
  0xa3   :  { %v233_v55 = vpop.f32.mrf.mxu2 }
  0xa4   :  { %v213_v42 = vpop.f32.mrf.mxu1  ;;  %v297_v8 = vmax.f32 %v3138_v21, %v233_v55  ;;  %v2134_v21 = vld [vmem:[%s4304_s2 + $0x420] sm:$0xff]  ;;  %v2140_v55 = vld [vmem:[%s4304_s2 + $0x450] sm:$0xff] }
  0xa5   :  { %v296_v36 = vmax.f32 %v3140_v22, %v213_v42  ;;  %v2164_v42 = vld [vmem:[%s4304_s2 + $0x4e8] sm:$0xff] }
  0xa6   :  { %v253_v47 = vpop.f32.mrf.mxu3 }
  0xa7   :  { %v273_v59 = vpop.f32.mrf.mxu0  ;;  %v298_v14 = vmax.f32 %v3180_v37, %v253_v47  ;;  %v2165_v37 = vld [vmem:[%s4304_s2 + $0x4f0] sm:$0xff]  ;;  %v2163_v47 = vld [vmem:[%s4304_s2 + $0x4e0] sm:$0xff] }
  0xa8   :  { %v299_v27 = vmax.f32 %v3142_v23, %v273_v59  ;;  %v2144_v23 = vld [vmem:[%s4304_s2 + $0x470] sm:$0xff]  ;;  %v2139_v59 = vld [vmem:[%s4304_s2 + $0x448] sm:$0xff] }
  0xae   :  { %v293_v57 = vpop.f32.mrf.mxu1 }
  0xaf   :  { %v300_v32 = vmax.f32 %v3203_v46, %v293_v57  ;;  %v2142_v46 = vld [vmem:[%s4304_s2 + $0x460] sm:$0xff]  ;;  %v2180_v57 = vld [vmem:[%s4304_s2 + $0x568] sm:$0xff] }
  0xb2   :  { %v369_v60 = vpop.f32.mrf.mxu3 }
  0xb4   :  { %v349_v61 = vpop.f32.mrf.mxu2 }
  0xb9   :  { %v389_v62 = vpop.f32.mrf.mxu0 }
  0xba   :  { %v409_v0 = vpop.f32.mrf.mxu1 }
  0xbb   :  { %v480_v1 = vpop.f32.mrf.mxu3 }
  0xbc   :  { %v563_v2 = vmax.f32 %v349_v61, %v480_v1  ;;  %v2179_v61 = vld [vmem:[%s4304_s2 + $0x560] sm:$0xff]  ;;  %v2178_v1 = vld [vmem:[%s4304_s2 + $0x558] sm:$0xff] }
  0xbe   :  { %v568_v4 = vmax.f32 %v296_v36, %v563_v2  ;;  %v2127_v36 = vld [vmem:[%s4304_s2 + $0x3e8] sm:$0xff]  ;;  %v2214_v2 = vld [vmem:[%s4304_s2 + $0x678] sm:$0xff] }
  0xc0   :  { %v3236_v5 = vadd.f32 %v575_v3, %v568_v4  ;;  %v429_v6 = vpop.f32.mrf.mxu2  ;;  %v2158_v3 = vld [vmem:[%s4304_s2 + $0x4b8] sm:$0xff]  ;;  %v2177_v4 = vld [vmem:[%s4304_s2 + $0x550] sm:$0xff] }
  0xc2   :  { %vm590_vm1 = vcmp.ge.f32.partialorder %v3236_v5, 0.5  ;;  %v2262_v5 = vld [vmem:[%s4304_s2 + $0x7d0] sm:$0xff] }
  0xc3   :  { %v500_v9 = vpop.f32.mrf.mxu0  ;;  %v520_v11 = vpop.f32.mrf.mxu1  ;;  %2069 = vmatmul.msk.f32.vlgmr.msrb.gmra.mxu0 %vm590_vm1, %v2408_v12 }
  0xc4   :  { %v564_v15 = vmax.f32 %v369_v60, %v500_v9  ;;  %v565_v16 = vmax.f32 %v389_v62, %v520_v11  ;;  %914 = vmatpush.msrb.mxu0 %v2137_v7  ;;  %v2160_v60 = vld [vmem:[%s4304_s2 + $0x4c8] sm:$0xff]  ;;  %v2128_v62 = vld [vmem:[%s4304_s2 + $0x3f0] sm:$0xff] }
  0xc5   :  { %v2213_v7 = vld [vmem:[%s4304_s2 + $0x670] sm:$0xff]  ;;  %v2176_v9 = vld [vmem:[%s4304_s2 + $0x548] sm:$0xff] }
  0xc6   :  { %v569_v19 = vmax.f32 %v297_v8, %v564_v15  ;;  %v570_v20 = vmax.f32 %v298_v14, %v565_v16  ;;  %915 = vmatpush.msrb.mxu0 %v2136_v13  ;;  %v2157_v8 = vld [vmem:[%s4304_s2 + $0x4b0] sm:$0xff]  ;;  %v2212_v11 = vld [vmem:[%s4304_s2 + $0x668] sm:$0xff]  ;;  %v2175_v14 = vld [vmem:[%s4304_s2 + $0x540] sm:$0xff] }
  0xc7   :  { %v2156_v13 = vld [vmem:[%s4304_s2 + $0x4a8] sm:$0xff]  ;;  %v2124_v15 = vld [vmem:[%s4304_s2 + $0x3d0] sm:$0xff]  ;;  %v2211_v16 = vld [vmem:[%s4304_s2 + $0x660] sm:$0xff] }
  0xc8   :  { %v3256_v22 = vadd.f32 %v576_v10, %v569_v19  ;;  %v3258_v24 = vadd.f32 %v577_v17, %v570_v20  ;;  %916 = vmatpush.msrb.mxu0 %v2135_v18  ;;  %v2125_v10 = vld [vmem:[%s4304_s2 + $0x3d8] sm:$0xff]  ;;  %v2155_v17 = vld [vmem:[%s4304_s2 + $0x4a0] sm:$0xff]  ;;  %v2123_v19 = vld [vmem:[%s4304_s2 + $0x3c8] sm:$0xff] }
  0xc9   :  { %v2174_v18 = vld [vmem:[%s4304_s2 + $0x538] sm:$0xff] }
  0xca   :  { %vm591_vm2 = vcmp.ge.f32.partialorder %v3256_v22, 0.5  ;;  %vm592_vm3 = vcmp.ge.f32.partialorder %v3258_v24, 0.5  ;;  %v540_v28 = vpop.f32.mrf.mxu2  ;;  %v560_v30 = vpop.f32.mrf.mxu3  ;;  %917 = vmatpush.msrb.mxu0 %v2134_v21  ;;  %v2210_v20 = vld [vmem:[%s4304_s2 + $0x658] sm:$0xff]  ;;  %v2246_v24 = vld [vmem:[%s4304_s2 + $0x750] sm:$0xff] }
  0xcb   :  { %v566_v33 = vmax.f32 %v409_v0, %v540_v28  ;;  %v567_v34 = vmax.f32 %v429_v6, %v560_v30  ;;  %2070 = vmatmul.msk.f32.vlgmr.msrb.gmra.mxu1 %vm591_vm2, %v2408_v12  ;;  %2071 = vmatmul.msk.f32.vlgmr.msrb.gmra.mxu2 %vm592_vm3, %v2408_v12  ;;  %v2159_v0 = vld [vmem:[%s4304_s2 + $0x4c0] sm:$0xff]  ;;  %v2154_v21 = vld [vmem:[%s4304_s2 + $0x498] sm:$0xff]  ;;  %v2153_v28 = vld [vmem:[%s4304_s2 + $0x490] sm:$0xff] }
  0xcc   :  { %942 = vmatpush.msrb.mxu1 %v2145_v25  ;;  %1028 = vmatpush.msrb.mxu2 %v2166_v26  ;;  %v2126_v6 = vld [vmem:[%s4304_s2 + $0x3e0] sm:$0xff]  ;;  %v2173_v25 = vld [vmem:[%s4304_s2 + $0x530] sm:$0xff]  ;;  %v2198_v30 = vld [vmem:[%s4304_s2 + $0x5f8] sm:$0xff] }
  0xcd   :  { %v571_v39 = vmax.f32 %v299_v27, %v566_v33  ;;  %v572_v40 = vmax.f32 %v300_v32, %v567_v34  ;;  %918 = vmatpush.msrb.mxu0 %v2133_v31  ;;  %v2122_v26 = vld [vmem:[%s4304_s2 + $0x3c0] sm:$0xff]  ;;  %v2209_v27 = vld [vmem:[%s4304_s2 + $0x650] sm:$0xff]  ;;  %v2208_v31 = vld [vmem:[%s4304_s2 + $0x648] sm:$0xff] }
  0xce   :  { %943 = vmatpush.msrb.mxu1 %v2144_v23  ;;  %1029 = vmatpush.msrb.mxu2 %v2165_v37  ;;  %v2152_v32 = vld [vmem:[%s4304_s2 + $0x488] sm:$0xff]  ;;  %v2171_v33 = vld [vmem:[%s4304_s2 + $0x520] sm:$0xff]  ;;  %v2197_v34 = vld [vmem:[%s4304_s2 + $0x5f0] sm:$0xff] }
  0xcf   :  { %v3297_v44 = vadd.f32 %v578_v29, %v571_v39  ;;  %v589_v45 = vadd.f32 %v579_v35, %v572_v40  ;;  %919 = vmatpush.msrb.mxu0 %v2132_v38  ;;  %v2172_v29 = vld [vmem:[%s4304_s2 + $0x528] sm:$0xff]  ;;  %v2207_v35 = vld [vmem:[%s4304_s2 + $0x640] sm:$0xff]  ;;  %v2170_v37 = vld [vmem:[%s4304_s2 + $0x518] sm:$0xff] }
  0xd0   :  { %944 = vmatpush.msrb.mxu1 %v2143_v41  ;;  %1030 = vmatpush.msrb.mxu2 %v2164_v42  ;;  %v2151_v23 = vld [vmem:[%s4304_s2 + $0x480] sm:$0xff]  ;;  %v2196_v38 = vld [vmem:[%s4304_s2 + $0x5e8] sm:$0xff]  ;;  %v2206_v39 = vld [vmem:[%s4304_s2 + $0x638] sm:$0xff] }
  0xd1   :  { %vm593_vm4 = vcmp.ge.f32.partialorder %v3297_v44, 0.5  ;;  %vm594_vm5 = vcmp.ge.f32.partialorder %v589_v45, 0.5  ;;  %920 = vmatpush.msrb.mxu0 %v2131_v43  ;;  %v2222_v40 = vld [vmem:[%s4304_s2 + $0x6b8] sm:$0xff]  ;;  %v2169_v41 = vld [vmem:[%s4304_s2 + $0x510] sm:$0xff]  ;;  %v2195_v42 = vld [vmem:[%s4304_s2 + $0x5e0] sm:$0xff] }
  0xd2   :  { %2072 = vmatmul.msk.f32.vlgmr.msrb.gmra.mxu3 %vm593_vm4, %v2408_v12  ;;  %945 = vmatpush.msrb.mxu1 %v2142_v46  ;;  %v3313_v50 = vsel %vm594_vm5, 1.0, %v2409_v49  ;;  %v2205_v43 = vld [vmem:[%s4304_s2 + $0x630] sm:$0xff]  ;;  %v2168_v46 = vld [vmem:[%s4304_s2 + $0x508] sm:$0xff] }
  0xd3   :  { %1031 = vmatpush.msrb.mxu2 %v2163_v47  ;;  %1048 = vmatpush.msrb.mxu3 %v2182_v48  ;;  %v2221_v45 = vld [vmem:[%s4304_s2 + $0x6b0] sm:$0xff]  ;;  %v2194_v47 = vld [vmem:[%s4304_s2 + $0x5d8] sm:$0xff]  ;;  %v2204_v48 = vld [vmem:[%s4304_s2 + $0x628] sm:$0xff] }
  0xd4   :  { %2073 = vmatmul.msk.f32.vlgmr.msra.gmra.mxu0 %vm677_vm6, %v3313_v50  ;;  %2146 = vmatmul.msk.f32.vlgmr.msra.gmra.mxu1 %vm590_vm1, %v2408_v12  ;;  %v2245_v44 = vld [vmem:[%s4304_s2 + $0x748] sm:$0xff] }
  0xd5   :  { %2147 = vmatmul.msk.f32.vlgmr.msra.gmra.mxu2 %vm591_vm2, %v2408_v12  ;;  %946 = vmatpush.msrb.mxu1 %v2141_v51  ;;  %v2220_v51 = vld [vmem:[%s4304_s2 + $0x6a8] sm:$0xff] }
  0xd6   :  { %1032 = vmatpush.msrb.mxu2 %v2162_v52  ;;  %1049 = vmatpush.msrb.mxu3 %v2181_v53  ;;  %v2167_v52 = vld [vmem:[%s4304_s2 + $0x500] sm:$0xff]  ;;  %v2193_v53 = vld [vmem:[%s4304_s2 + $0x5d0] sm:$0xff] }
  0xd7   :  { %921 = vmatpush.msrb.mxu0 %v2130_v54  ;;  %947 = vmatpush.msrb.mxu1 %v2140_v55  ;;  %v2203_v54 = vld [vmem:[%s4304_s2 + $0x620] sm:$0xff] }
  0xd8   :  { %1033 = vmatpush.msrb.mxu2 %v2161_v56  ;;  %1050 = vmatpush.msrb.mxu3 %v2180_v57  ;;  %v2219_v55 = vld [vmem:[%s4304_s2 + $0x6a0] sm:$0xff]  ;;  %v2243_v56 = vld [vmem:[%s4304_s2 + $0x738] sm:$0xff]  ;;  %v2192_v57 = vld [vmem:[%s4304_s2 + $0x5c8] sm:$0xff] }
  0xd9   :  { %922 = vmatpush.msrb.mxu0 %v2129_v58  ;;  %948 = vmatpush.msrb.mxu1 %v2139_v59  ;;  %v2202_v58 = vld [vmem:[%s4304_s2 + $0x618] sm:$0xff] }
  0xda   :  { %1034 = vmatpush.msrb.mxu2 %v2160_v60  ;;  %1051 = vmatpush.msrb.mxu3 %v2179_v61  ;;  %v2218_v59 = vld [vmem:[%s4304_s2 + $0x698] sm:$0xff]  ;;  %v2242_v60 = vld [vmem:[%s4304_s2 + $0x730] sm:$0xff]  ;;  %v2191_v61 = vld [vmem:[%s4304_s2 + $0x5c0] sm:$0xff] }
  0xdb   :  { %923 = vmatpush.msrb.mxu0 %v2128_v62  ;;  %2148 = vmatmul.msk.f32.vlgmr.msra.gmra.mxu3 %vm592_vm3, %v2408_v12  ;;  %v2201_v62 = vld [vmem:[%s4304_s2 + $0x610] sm:$0xff] }
  0xdc   :  { %949 = vmatpush.msrb.mxu1 %v2138_v63  ;;  %1035 = vmatpush.msrb.mxu2 %v2159_v0  ;;  %v2217_v63 = vld [vmem:[%s4304_s2 + $0x690] sm:$0xff]  ;;  %v2241_v0 = vld [vmem:[%s4304_s2 + $0x728] sm:$0xff] }
  0xdd   :  { %1052 = vmatpush.msrb.mxu3 %v2178_v1  ;;  %924 = vmatpush.msrb.mxu0 %v2127_v36  ;;  %v2190_v1 = vld [vmem:[%s4304_s2 + $0x5b8] sm:$0xff]  ;;  %v2200_v36 = vld [vmem:[%s4304_s2 + $0x608] sm:$0xff] }
  0xde   :  { %1088 = vmatpush.msra.mxu1 %v2214_v2  ;;  %1036 = vmatpush.msrb.mxu2 %v2158_v3  ;;  %v2216_v2 = vld [vmem:[%s4304_s2 + $0x688] sm:$0xff]  ;;  %v2240_v3 = vld [vmem:[%s4304_s2 + $0x720] sm:$0xff] }
  0xdf   :  { %2150 = vmatmul.msk.f32.vlgmr.msrb.gmra.mxu1 %vm677_vm6, %v3313_v50  ;;  %1053 = vmatpush.msrb.mxu3 %v2177_v4  ;;  %v2189_v4 = vld [vmem:[%s4304_s2 + $0x5b0] sm:$0xff] }
  0xe0   :  { %925 = vmatpush.msrb.mxu0 %v2126_v6  ;;  %1089 = vmatpush.msra.mxu1 %v2213_v7  ;;  %v2199_v6 = vld [vmem:[%s4304_s2 + $0x600] sm:$0xff] }
  0xe1   :  { %1037 = vmatpush.msrb.mxu2 %v2157_v8  ;;  %1054 = vmatpush.msrb.mxu3 %v2176_v9  ;;  %v2215_v7 = vld [vmem:[%s4304_s2 + $0x680] sm:$0xff]  ;;  %v2239_v8 = vld [vmem:[%s4304_s2 + $0x718] sm:$0xff]  ;;  %v2188_v9 = vld [vmem:[%s4304_s2 + $0x5a8] sm:$0xff] }
  0xe2   :  { %926 = vmatpush.msrb.mxu0 %v2125_v10  ;;  %1090 = vmatpush.msra.mxu1 %v2212_v11  ;;  %v2275_v10 = vld [vmem:[%s4304_s2 + $0x838] sm:$0xff] }
  0xe3   :  { %1038 = vmatpush.msrb.mxu2 %v2156_v13  ;;  %1055 = vmatpush.msrb.mxu3 %v2175_v14  ;;  %v2291_v11 = vld [vmem:[%s4304_s2 + $0x8b8] sm:$0xff]  ;;  %v2238_v13 = vld [vmem:[%s4304_s2 + $0x710] sm:$0xff]  ;;  %v2187_v14 = vld [vmem:[%s4304_s2 + $0x5a0] sm:$0xff] }
  0xe4   :  { %927 = vmatpush.msrb.mxu0 %v2124_v15  ;;  %1091 = vmatpush.msra.mxu1 %v2211_v16  ;;  %v2274_v15 = vld [vmem:[%s4304_s2 + $0x830] sm:$0xff] }
  0xe5   :  { %1039 = vmatpush.msrb.mxu2 %v2155_v17  ;;  %1056 = vmatpush.msrb.mxu3 %v2174_v18  ;;  %v2290_v16 = vld [vmem:[%s4304_s2 + $0x8b0] sm:$0xff]  ;;  %v2237_v17 = vld [vmem:[%s4304_s2 + $0x708] sm:$0xff]  ;;  %v2186_v18 = vld [vmem:[%s4304_s2 + $0x598] sm:$0xff] }
  0xe6   :  { %928 = vmatpush.msrb.mxu0 %v2123_v19  ;;  %1092 = vmatpush.msra.mxu1 %v2210_v20  ;;  %v2273_v19 = vld [vmem:[%s4304_s2 + $0x828] sm:$0xff] }
  0xe7   :  { %1040 = vmatpush.msrb.mxu2 %v2154_v21  ;;  %1057 = vmatpush.msrb.mxu3 %v2173_v25  ;;  %v2289_v20 = vld [vmem:[%s4304_s2 + $0x8a8] sm:$0xff]  ;;  %v2236_v21 = vld [vmem:[%s4304_s2 + $0x700] sm:$0xff]  ;;  %v2185_v25 = vld [vmem:[%s4304_s2 + $0x590] sm:$0xff] }
  0xe8   :  { %929 = vmatpush.msrb.mxu0 %v2122_v26  ;;  %1093 = vmatpush.msra.mxu1 %v2209_v27  ;;  %v2272_v26 = vld [vmem:[%s4304_s2 + $0x820] sm:$0xff] }
  0xe9   :  { %2149 = vmatmul.msk.f32.vlgmr.msrb.gmra.mxu0 %vm593_vm4, %v2408_v12  ;;  %1041 = vmatpush.msrb.mxu2 %v2153_v28  ;;  %v2288_v27 = vld [vmem:[%s4304_s2 + $0x8a0] sm:$0xff]  ;;  %v2235_v28 = vld [vmem:[%s4304_s2 + $0x6f8] sm:$0xff] }
  0xea   :  { %1058 = vmatpush.msrb.mxu3 %v2172_v29  ;;  %1068 = vmatpush.msra.mxu0 %v2198_v30  ;;  %v2184_v29 = vld [vmem:[%s4304_s2 + $0x588] sm:$0xff]  ;;  %v2271_v30 = vld [vmem:[%s4304_s2 + $0x818] sm:$0xff] }
  0xeb   :  { %1094 = vmatpush.msra.mxu1 %v2208_v31  ;;  %1042 = vmatpush.msrb.mxu2 %v2152_v32  ;;  %v2287_v31 = vld [vmem:[%s4304_s2 + $0x898] sm:$0xff]  ;;  %v2234_v32 = vld [vmem:[%s4304_s2 + $0x6f0] sm:$0xff] }
  0xec   :  { %1059 = vmatpush.msrb.mxu3 %v2171_v33  ;;  %1069 = vmatpush.msra.mxu0 %v2197_v34  ;;  %v2183_v33 = vld [vmem:[%s4304_s2 + $0x580] sm:$0xff]  ;;  %v2270_v34 = vld [vmem:[%s4304_s2 + $0x810] sm:$0xff] }
  0xed   :  { %1095 = vmatpush.msra.mxu1 %v2207_v35  ;;  %1043 = vmatpush.msrb.mxu2 %v2151_v23  ;;  %v2286_v35 = vld [vmem:[%s4304_s2 + $0x890] sm:$0xff]  ;;  %v2233_v23 = vld [vmem:[%s4304_s2 + $0x6e8] sm:$0xff] }
  0xee   :  { %1060 = vmatpush.msrb.mxu3 %v2170_v37  ;;  %1070 = vmatpush.msra.mxu0 %v2196_v38  ;;  %v2259_v37 = vld [vmem:[%s4304_s2 + $0x7b8] sm:$0xff]  ;;  %v2269_v38 = vld [vmem:[%s4304_s2 + $0x808] sm:$0xff] }
  0xef   :  { %2223 = vmatmul.msk.f32.vlgmr.msrb.gmra.mxu2 %vm590_vm1, %v2408_v12  ;;  %1096 = vmatpush.msra.mxu1 %v2206_v39  ;;  %v2285_v39 = vld [vmem:[%s4304_s2 + $0x888] sm:$0xff] }
  0xf0   :  { %1116 = vmatpush.msra.mxu2 %v2222_v40  ;;  %1061 = vmatpush.msrb.mxu3 %v2169_v41  ;;  %v2232_v40 = vld [vmem:[%s4304_s2 + $0x6e0] sm:$0xff]  ;;  %v2258_v41 = vld [vmem:[%s4304_s2 + $0x7b0] sm:$0xff] }
  0xf1   :  { %1071 = vmatpush.msra.mxu0 %v2195_v42  ;;  %1097 = vmatpush.msra.mxu1 %v2205_v43  ;;  %v2268_v42 = vld [vmem:[%s4304_s2 + $0x800] sm:$0xff] }
  0xf2   :  { %1117 = vmatpush.msra.mxu2 %v2221_v45  ;;  %1062 = vmatpush.msrb.mxu3 %v2168_v46  ;;  %v2284_v43 = vld [vmem:[%s4304_s2 + $0x880] sm:$0xff]  ;;  %v2231_v45 = vld [vmem:[%s4304_s2 + $0x6d8] sm:$0xff]  ;;  %v2257_v46 = vld [vmem:[%s4304_s2 + $0x7a8] sm:$0xff] }
  0xf3   :  { %1072 = vmatpush.msra.mxu0 %v2194_v47  ;;  %1098 = vmatpush.msra.mxu1 %v2204_v48  ;;  %v2267_v47 = vld [vmem:[%s4304_s2 + $0x7f8] sm:$0xff] }
  0xf4   :  { %1118 = vmatpush.msra.mxu2 %v2220_v51  ;;  %1063 = vmatpush.msrb.mxu3 %v2167_v52  ;;  %v2283_v48 = vld [vmem:[%s4304_s2 + $0x878] sm:$0xff]  ;;  %v2230_v51 = vld [vmem:[%s4304_s2 + $0x6d0] sm:$0xff]  ;;  %v2256_v52 = vld [vmem:[%s4304_s2 + $0x7a0] sm:$0xff] }
  0xf5   :  { %1073 = vmatpush.msra.mxu0 %v2193_v53  ;;  %2224 = vmatmul.msk.f32.vlgmr.msrb.gmra.mxu3 %vm591_vm2, %v2408_v12  ;;  %v2266_v53 = vld [vmem:[%s4304_s2 + $0x7f0] sm:$0xff] }
  0xf6   :  { %1099 = vmatpush.msra.mxu1 %v2203_v54  ;;  %1119 = vmatpush.msra.mxu2 %v2219_v55  ;;  %v2282_v54 = vld [vmem:[%s4304_s2 + $0x870] sm:$0xff]  ;;  %v2229_v55 = vld [vmem:[%s4304_s2 + $0x6c8] sm:$0xff] }
  0xf7   :  { %1201 = vmatpush.msra.mxu3 %v2243_v56  ;;  %1074 = vmatpush.msra.mxu0 %v2192_v57  ;;  %v2255_v56 = vld [vmem:[%s4304_s2 + $0x798] sm:$0xff]  ;;  %v2265_v57 = vld [vmem:[%s4304_s2 + $0x7e8] sm:$0xff] }
  0xf8   :  { %1100 = vmatpush.msra.mxu1 %v2202_v58  ;;  %1120 = vmatpush.msra.mxu2 %v2218_v59  ;;  %v2281_v58 = vld [vmem:[%s4304_s2 + $0x868] sm:$0xff]  ;;  %v2228_v59 = vld [vmem:[%s4304_s2 + $0x6c0] sm:$0xff] }
  0xf9   :  { %1202 = vmatpush.msra.mxu3 %v2242_v60  ;;  %1075 = vmatpush.msra.mxu0 %v2191_v61  ;;  %v2254_v60 = vld [vmem:[%s4304_s2 + $0x790] sm:$0xff]  ;;  %v2264_v61 = vld [vmem:[%s4304_s2 + $0x7e0] sm:$0xff] }
  0xfa   :  { %1101 = vmatpush.msra.mxu1 %v2201_v62  ;;  %1121 = vmatpush.msra.mxu2 %v2217_v63  ;;  %v2280_v62 = vld [vmem:[%s4304_s2 + $0x860] sm:$0xff]  ;;  %v2299_v63 = vld [vmem:[%s4304_s2 + $0x8f8] sm:$0xff] }
  0xfb   :  { %1203 = vmatpush.msra.mxu3 %v2241_v0  ;;  %1076 = vmatpush.msra.mxu0 %v2190_v1  ;;  %v2253_v0 = vld [vmem:[%s4304_s2 + $0x788] sm:$0xff]  ;;  %v2263_v1 = vld [vmem:[%s4304_s2 + $0x7d8] sm:$0xff] }
  0xfc   :  { %1102 = vmatpush.msra.mxu1 %v2200_v36  ;;  %1122 = vmatpush.msra.mxu2 %v2216_v2  ;;  %v2279_v36 = vld [vmem:[%s4304_s2 + $0x858] sm:$0xff]  ;;  %v2298_v2 = vld [vmem:[%s4304_s2 + $0x8f0] sm:$0xff] }
  0xfd   :  { %1204 = vmatpush.msra.mxu3 %v2240_v3  ;;  %1077 = vmatpush.msra.mxu0 %v2189_v4  ;;  %v2252_v3 = vld [vmem:[%s4304_s2 + $0x780] sm:$0xff]  ;;  %v2278_v4 = vld [vmem:[%s4304_s2 + $0x850] sm:$0xff] }
  0xfe   :  { %1103 = vmatpush.msra.mxu1 %v2199_v6  ;;  %1123 = vmatpush.msra.mxu2 %v2215_v7  ;;  %v2297_v6 = vld [vmem:[%s4304_s2 + $0x8e8] sm:$0xff]  ;;  %v2251_v7 = vld [vmem:[%s4304_s2 + $0x778] sm:$0xff] }
  0xff   :  { %1205 = vmatpush.msra.mxu3 %v2239_v8  ;;  %1078 = vmatpush.msra.mxu0 %v2188_v9  ;;  %v2261_v8 = vld [vmem:[%s4304_s2 + $0x7c8] sm:$0xff] }
 0x100   :  { %2226 = vmatmul.msk.f32.vlgmr.msra.gmra.mxu1 %vm593_vm4, %v2408_v12  ;;  %2227 = vmatmul.msk.f32.vlgmr.msra.gmra.mxu2 %vm677_vm6, %v3313_v50  ;;  %v2277_v9 = vld [vmem:[%s4304_s2 + $0x848] sm:$0xff] }
 0x101   :  { %1241 = vmatpush.msrb.mxu1 %v2275_v10  ;;  %1261 = vmatpush.msrb.mxu2 %v2291_v11  ;;  %v2296_v10 = vld [vmem:[%s4304_s2 + $0x8e0] sm:$0xff]  ;;  %v2250_v11 = vld [vmem:[%s4304_s2 + $0x770] sm:$0xff] }
 0x102   :  { %1206 = vmatpush.msra.mxu3 %v2238_v13  ;;  %1079 = vmatpush.msra.mxu0 %v2187_v14  ;;  %v2260_v13 = vld [vmem:[%s4304_s2 + $0x7c0] sm:$0xff] }
 0x103   :  { %1242 = vmatpush.msrb.mxu1 %v2274_v15  ;;  %1262 = vmatpush.msrb.mxu2 %v2290_v16  ;;  %v2276_v14 = vld [vmem:[%s4304_s2 + $0x840] sm:$0xff]  ;;  %v2295_v15 = vld [vmem:[%s4304_s2 + $0x8d8] sm:$0xff]  ;;  %v2249_v16 = vld [vmem:[%s4304_s2 + $0x768] sm:$0xff] }
 0x104   :  { %1207 = vmatpush.msra.mxu3 %v2237_v17  ;;  %1080 = vmatpush.msra.mxu0 %v2186_v18  ;;  %v2294_v17 = vld [vmem:[%s4304_s2 + $0x8d0] sm:$0xff]  ;;  %v2248_v18 = vld [vmem:[%s4304_s2 + $0x760] sm:$0xff] }
 0x105   :  { %1243 = vmatpush.msrb.mxu1 %v2273_v19  ;;  %1263 = vmatpush.msrb.mxu2 %v2289_v20  ;;  %v2293_v19 = vld [vmem:[%s4304_s2 + $0x8c8] sm:$0xff]  ;;  %v2247_v20 = vld [vmem:[%s4304_s2 + $0x758] sm:$0xff] }
 0x106   :  { %1208 = vmatpush.msra.mxu3 %v2236_v21  ;;  %1081 = vmatpush.msra.mxu0 %v2185_v25  ;;  %v2292_v21 = vld [vmem:[%s4304_s2 + $0x8c0] sm:$0xff] }
 0x107   :  { %1244 = vmatpush.msrb.mxu1 %v2272_v26  ;;  %1264 = vmatpush.msrb.mxu2 %v2288_v27  ;;  %v2244_v25 = vld [vmem:[%s4304_s2 + $0x740] sm:$0xff] }
 0x108   :  { %1209 = vmatpush.msra.mxu3 %v2235_v28  ;;  %1082 = vmatpush.msra.mxu0 %v2184_v29  ;;  %v1320_v28 = vld [vmem:[%s4307_s5 + $0x40] sm:$0xff] }
 0x109   :  { %1245 = vmatpush.msrb.mxu1 %v2271_v30  ;;  %1265 = vmatpush.msrb.mxu2 %v2287_v31  ;;  %v1318_v31 = vld [vmem:[%s4307_s5 + $0x30] sm:$0xff] }
 0x10a   :  { %1210 = vmatpush.msra.mxu3 %v2234_v32  ;;  %1083 = vmatpush.msra.mxu0 %v2183_v33  ;;  %v1316_v33 = vld [vmem:[%s4307_s5 + $0x20] sm:$0xff] }
 0x10b   :  { %1246 = vmatpush.msrb.mxu1 %v2270_v34  ;;  %1266 = vmatpush.msrb.mxu2 %v2286_v35  ;;  %v1315_v34 = vld [vmem:[%s4307_s5 + $0x18] sm:$0xff] }
 0x10c   :  { %2225 = vmatmul.msk.f32.vlgmr.msra.gmra.mxu0 %vm592_vm3, %v2408_v12  ;;  %1211 = vmatpush.msra.mxu3 %v2233_v23  ;;  %v1314_v23 = vld [vmem:[%s4307_s5 + $0x10] sm:$0xff] }
 0x10d   :  { %1221 = vmatpush.msrb.mxu0 %v2259_v37  ;;  %1247 = vmatpush.msrb.mxu1 %v2269_v38  ;;  %v1313_v37 = vld [vmem:[%s4307_s5 + $0x8] sm:$0xff] }
 0x10e   :  { %1267 = vmatpush.msrb.mxu2 %v2285_v39  ;;  %1212 = vmatpush.msra.mxu3 %v2232_v40  ;;  %v1312_v39 = vld [vmem:[%s4307_s5] sm:$0xff] }
 0x10f   :  { %1222 = vmatpush.msrb.mxu0 %v2258_v41  ;;  %1248 = vmatpush.msrb.mxu1 %v2268_v42  ;;  %v2315_v41 = vld [vmem:[%s4307_s5 + $0x70] sm:$0xff]  ;;  %v2314_v42 = vld [vmem:[%s4307_s5 + $0x68] sm:$0xff] }
 0x110   :  { %1268 = vmatpush.msrb.mxu2 %v2284_v43  ;;  %1213 = vmatpush.msra.mxu3 %v2231_v45  ;;  %v2313_v45 = vld [vmem:[%s4307_s5 + $0x60] sm:$0xff] }
 0x111   :  { %1223 = vmatpush.msrb.mxu0 %v2257_v46  ;;  %1249 = vmatpush.msrb.mxu1 %v2267_v47 }
 0x112   :  { %1269 = vmatpush.msrb.mxu2 %v2283_v48  ;;  %1214 = vmatpush.msra.mxu3 %v2230_v51 }
 0x113   :  { %1224 = vmatpush.msrb.mxu0 %v2256_v52  ;;  %1250 = vmatpush.msrb.mxu1 %v2266_v53 }
 0x114   :  { %1270 = vmatpush.msrb.mxu2 %v2282_v54  ;;  %1215 = vmatpush.msra.mxu3 %v2229_v55 }
 0x115   :  { %1225 = vmatpush.msrb.mxu0 %v2255_v56  ;;  %1251 = vmatpush.msrb.mxu1 %v2265_v57 }
 0x116   :  { %1271 = vmatpush.msrb.mxu2 %v2281_v58  ;;  %1216 = vmatpush.msra.mxu3 %v2228_v59 }
 0x117   :  { %1226 = vmatpush.msrb.mxu0 %v2254_v60  ;;  %2300 = vmatmul.msk.f32.vlgmr.msra.gmra.mxu3 %vm590_vm1, %v2408_v12 }
 0x118   :  { %1252 = vmatpush.msrb.mxu1 %v2264_v61  ;;  %1272 = vmatpush.msrb.mxu2 %v2280_v62 }
 0x119   :  { %1289 = vmatpush.msrb.mxu3 %v2299_v63  ;;  %1227 = vmatpush.msrb.mxu0 %v2253_v0 }
 0x11a   :  { %1253 = vmatpush.msrb.mxu1 %v2263_v1  ;;  %1273 = vmatpush.msrb.mxu2 %v2279_v36 }
 0x11b   :  { %1290 = vmatpush.msrb.mxu3 %v2298_v2  ;;  %1228 = vmatpush.msrb.mxu0 %v2252_v3 }
 0x11c   :  { %1254 = vmatpush.msrb.mxu1 %v2262_v5  ;;  %1274 = vmatpush.msrb.mxu2 %v2278_v4 }
 0x11d   :  { %1291 = vmatpush.msrb.mxu3 %v2297_v6  ;;  %1229 = vmatpush.msrb.mxu0 %v2251_v7  ;;  %v2305_v6 = vld [vmem:[%s4308_s6 + $0x5] sm:$0x1f] }
 0x11e   :  { %1255 = vmatpush.msrb.mxu1 %v2261_v8  ;;  %1275 = vmatpush.msrb.mxu2 %v2277_v9 }
 0x11f   :  { %1292 = vmatpush.msrb.mxu3 %v2296_v10  ;;  %1230 = vmatpush.msrb.mxu0 %v2250_v11 }
 0x120   :  { %1256 = vmatpush.msrb.mxu1 %v2260_v13  ;;  %1276 = vmatpush.msrb.mxu2 %v2276_v14  ;;  %v1306_v13 = vperm.slane %v2305_v6, 0 }
 0x121   :  { %1293 = vmatpush.msrb.mxu3 %v2295_v15  ;;  %1231 = vmatpush.msrb.mxu0 %v2249_v16 }
 0x122   :  { %2302 = vmatmul.msk.f32.vlgmr.msrb.gmra.mxu1 %vm592_vm3, %v2408_v12  ;;  %2303 = vmatmul.msk.f32.vlgmr.msrb.gmra.mxu2 %vm593_vm4, %v2408_v12 }
 0x123   :  { %1294 = vmatpush.msrb.mxu3 %v2294_v17  ;;  %1232 = vmatpush.msrb.mxu0 %v2248_v18  ;;  %v2312_v17 = vld [vmem:[%s4307_s5 + $0x58] sm:$0xff]  ;;  %v2311_v18 = vld [vmem:[%s4307_s5 + $0x50] sm:$0xff] }
 0x124   :  { %1378 = vmatpush.msra.mxu1 %v2315_v41  ;;  %v2329_v41 = vld [vmem:[%s4307_s5 + $0x120] sm:$0xff] }
 0x125   :  { %1295 = vmatpush.msrb.mxu3 %v2293_v19  ;;  %1233 = vmatpush.msrb.mxu0 %v2247_v20  ;;  %v2310_v19 = vld [vmem:[%s4307_s5 + $0x48] sm:$0xff]  ;;  %v2321_v20 = vld [vmem:[%s4307_s5 + $0xa0] sm:$0xff] }
 0x126   :  { %1379 = vmatpush.msra.mxu1 %v2314_v42 }
 0x127   :  { %1296 = vmatpush.msrb.mxu3 %v2292_v21  ;;  %1234 = vmatpush.msrb.mxu0 %v2246_v24  ;;  %v2307_v21 = vld [vmem:[%s4308_s6 + $0xa] sm:$0x1f] }
 0x128   :  { %2304 = vmatmul.msk.f32.vlgmr.msrb.gmra.mxu3 %vm677_vm6, %v3313_v50  ;;  %v1319_v50 = vld [vmem:[%s4307_s5 + $0x38] sm:$0xff]  ;;  %1380 = vmatpush.msra.mxu1 %v2313_v45  ;;  %v1324_v24 = vperm.slane %v2307_v21, 0  ;;  %v1579_v21 = vld [vmem:[%s4305_s3 + $0x108] sm:$0xff] }
 0x129   :  { %1235 = vmatpush.msrb.mxu0 %v2245_v44 }
 0x12a   :  { %1381 = vmatpush.msra.mxu1 %v2312_v17  ;;  %v1584_v17 = vld [vmem:[%s4305_s3 + $0x130] sm:$0xff] }
 0x12b   :  { %1236 = vmatpush.msrb.mxu0 %v2244_v25 }
 0x12c   :  { %2301 = vmatmul.msk.f32.vlgmr.msrb.gmra.mxu0 %vm591_vm2, %v2408_v12  ;;  %v1317_v12 = vld [vmem:[%s4307_s5 + $0x28] sm:$0xff]  ;;  %1382 = vmatpush.msra.mxu1 %v2311_v18  ;;  %v1556_v18 = vld [vmem:[%s4305_s3 + $0x50] sm:$0xff] }
 0x12d   :  { %1337 = vmatpush.msra.mxu0 %v1320_v28  ;;  %v2319_v28 = vld [vmem:[%s4307_s5 + $0x90] sm:$0xff] }
 0x12e   :  { %1383 = vmatpush.msra.mxu1 %v2310_v19  ;;  %v1577_v19 = vld [vmem:[%s4305_s3 + $0xf8] sm:$0xff] }
 0x12f   :  { %1338 = vmatpush.msra.mxu0 %v1319_v50  ;;  %v2316_v50 = vld [vmem:[%s4308_s6 + $0xf] sm:$0x1f] }
 0x131   :  { %1339 = vmatpush.msra.mxu0 %v1318_v31 }
 0x133   :  { %1340 = vmatpush.msra.mxu0 %v1317_v12 }
 0x135   :  { %1341 = vmatpush.msra.mxu0 %v1316_v33  ;;  %v2322_v33 = vld [vmem:[%s4308_s6 + $0x14] sm:$0x1f] }
 0x137   :  { %1342 = vmatpush.msra.mxu0 %v1315_v34  ;;  %v1398_v34 = vperm.slane %v2322_v33, 0  ;;  %v1557_v33 = vld [vmem:[%s4305_s3 + $0x58] sm:$0xff] }
 0x139   :  { %1343 = vmatpush.msra.mxu0 %v1314_v23 }
 0x13b   :  { %1344 = vmatpush.msra.mxu0 %v1313_v37 }
 0x13d   :  { %1345 = vmatpush.msra.mxu0 %v1312_v39  ;;  %v2331_v39 = vld [vmem:[%s4307_s5 + $0x130] sm:$0xff] }
 0x13e   :  { %1492 = vmatpush.msra.mxu2 %v2331_v39  ;;  %v1554_v39 = vld [vmem:[%s4305_s3 + $0x40] sm:$0xff] }
 0x13f   :  { %1417 = vmatpush.msrb.mxu0 %v2321_v20  ;;  %v1578_v20 = vld [vmem:[%s4305_s3 + $0x100] sm:$0xff] }
 0x140   :  { %v698_v27 = vpop.f32.mrf.mxu0 }
 0x148   :  { %v718_v26 = vpop.f32.mrf.mxu1 }
 0x149   :  { %v719_v56 = vadd.f32 %v718_v26, %v698_v27  ;;  %v2320_v27 = vld [vmem:[%s4307_s5 + $0x98] sm:$0xff] }
 0x14a   :  { %1418 = vmatpush.msrb.mxu0 %v2320_v27  ;;  %v1546_v27 = vld [vmem:[%s4305_s3] sm:$0xff] }
 0x14c   :  { %1419 = vmatpush.msrb.mxu0 %v2319_v28  ;;  %v1567_v28 = vld [vmem:[%s4305_s3 + $0xa8] sm:$0xff] }
 0x14e   :  { %v738_v29 = vpop.f32.mrf.mxu2 }
 0x14f   :  { %v739_v60 = vadd.f32 %v738_v29, %v719_v56  ;;  %v2326_v29 = vld [vmem:[%s4307_s5 + $0xe0] sm:$0xff] }
 0x150   :  { %1455 = vmatpush.msra.mxu3 %v2326_v29  ;;  %v2337_v56 = vld [vmem:[%s4307_s5 + $0x180] sm:$0xff]  ;;  %v1568_v29 = vld [vmem:[%s4305_s3 + $0xb0] sm:$0xff] }
 0x151   :  { %v778_v22 = vpop.f32.mrf.mxu0  ;;  %v871_v32 = vpop.f32.mrf.mxu1 }
 0x155   :  { %v758_v30 = vpop.f32.mrf.mxu3 }
 0x156   :  { %v759_v0 = vadd.f32 %v758_v30, %v739_v60  ;;  %v1363_v30 = vperm.slane %v2316_v50, 0  ;;  %v1586_v60 = vld [vmem:[%s4305_s3 + $0x140] sm:$0xff]  ;;  %v1569_v50 = vld [vmem:[%s4305_s3 + $0xb8] sm:$0xff] }
 0x157   :  { %1614 = vmatpush.msrb.mxu1 %v1586_v60  ;;  %v1767_v60 = vld [vmem:[%s4306_s4 + $0xf0] sm:$0xff] }
 0x158   :  { %v891_v35 = vpop.f32.mrf.mxu2  ;;  %v779_v7 = vadd.f32 %v778_v22, %v759_v0  ;;  %v1588_v0 = vld [vmem:[%s4305_s3 + $0x150] sm:$0xff] }
 0x159   :  { %v892_v53 = vadd.f32 %v891_v35, %v871_v32  ;;  %v2325_v32 = vld [vmem:[%s4307_s5 + $0xd8] sm:$0xff] }
 0x15a   :  { %1456 = vmatpush.msra.mxu3 %v2325_v32  ;;  %v1585_v32 = vld [vmem:[%s4305_s3 + $0x138] sm:$0xff] }
 0x15c   :  { %v951_v43 = vpop.f32.mrf.mxu1 }
 0x15e   :  { %v911_v38 = vpop.f32.mrf.mxu3 }
 0x15f   :  { %v912_v57 = vadd.f32 %v911_v38, %v892_v53 }
 0x166   :  { %v931_v40 = vpop.f32.mrf.mxu0 }
 0x167   :  { %v932_v61 = vadd.f32 %v931_v40, %v912_v57  ;;  %v2330_v40 = vld [vmem:[%s4307_s5 + $0x128] sm:$0xff]  ;;  %v2336_v57 = vld [vmem:[%s4307_s5 + $0x178] sm:$0xff] }
 0x168   :  { %1493 = vmatpush.msra.mxu2 %v2330_v40  ;;  %v1575_v40 = vld [vmem:[%s4305_s3 + $0xe8] sm:$0xff] }
 0x169   :  { %v952_v3 = vadd.f32 %v951_v43, %v932_v61  ;;  %v1581_v61 = vld [vmem:[%s4305_s3 + $0x118] sm:$0xff] }
 0x16a   :  { %1494 = vmatpush.msra.mxu2 %v2329_v41  ;;  %1615 = vmatpush.msrb.mxu1 %v1581_v61  ;;  %v1547_v41 = vld [vmem:[%s4305_s3 + $0x8] sm:$0xff]  ;;  %v1781_v61 = vld [vmem:[%s4306_s4 + $0x160] sm:$0xff] }
 0x16b   :  { %v954_v10 = vmax.f32 %v779_v7, %v952_v3  ;;  %v1561_v3 = vld [vmem:[%s4305_s3 + $0x78] sm:$0xff] }
 0x172   :  { %v1045_v46 = vpop.f32.mrf.mxu2 }
 0x178   :  { %v1065_v47 = vpop.f32.mrf.mxu3 }
 0x179   :  { %v1066_v54 = vadd.f32 %v1065_v47, %v1045_v46 }
 0x17d   :  { %v1105_v51 = vpop.f32.mrf.mxu1 }
 0x183   :  { %v1125_v52 = vpop.f32.mrf.mxu2 }
 0x189   :  { %v1085_v48 = vpop.f32.mrf.mxu0 }
 0x18a   :  { %v1086_v58 = vadd.f32 %v1085_v48, %v1066_v54  ;;  %v2339_v54 = vld [vmem:[%s4307_s5 + $0x190] sm:$0xff] }
 0x18b   :  { %1530 = vmatpush.msrb.mxu3 %v2339_v54  ;;  %v1750_v54 = vld [vmem:[%s4306_s4 + $0x68] sm:$0xff] }
 0x18c   :  { %v1106_v1 = vadd.f32 %v1105_v51, %v1086_v58  ;;  %v2335_v58 = vld [vmem:[%s4307_s5 + $0x170] sm:$0xff] }
 0x18e   :  { %v1126_v8 = vadd.f32 %v1125_v52, %v1106_v1  ;;  %v1589_v1 = vld [vmem:[%s4305_s3 + $0x158] sm:$0xff] }
 0x19a   :  { %v1218_v55 = vpop.f32.mrf.mxu3 }
 0x19f   :  { %v1258_v63 = vpop.f32.mrf.mxu1 }
 0x1a5   :  { %v1278_v2 = vpop.f32.mrf.mxu2 }
 0x1a9   :  { %v1238_v59 = vpop.f32.mrf.mxu0 }
 0x1aa   :  { %v1239_v62 = vadd.f32 %v1238_v59, %v1218_v55  ;;  %v2338_v55 = vld [vmem:[%s4307_s5 + $0x188] sm:$0xff] }
 0x1ab   :  { %v1298_v4 = vpop.f32.mrf.mxu3  ;;  %1531 = vmatpush.msrb.mxu3 %v2338_v55  ;;  %v2334_v59 = vld [vmem:[%s4307_s5 + $0x168] sm:$0xff]  ;;  %v1783_v55 = vld [vmem:[%s4306_s4 + $0x170] sm:$0xff] }
 0x1ac   :  { %v1259_v36 = vadd.f32 %v1258_v63, %v1239_v62  ;;  %v1587_v62 = vld [vmem:[%s4305_s3 + $0x148] sm:$0xff]  ;;  %v1576_v63 = vld [vmem:[%s4305_s3 + $0xf0] sm:$0xff] }
 0x1ad   :  { %1532 = vmatpush.msrb.mxu3 %v2337_v56  ;;  %1634 = vmatpush.msrb.mxu2 %v1587_v62  ;;  %v2340_v56 = vld [vmem:[%s4308_s6 + $0x23] sm:$0x1f] }
 0x1ae   :  { %v1279_v5 = vadd.f32 %v1278_v2, %v1259_v36  ;;  %v1571_v36 = vld [vmem:[%s4305_s3 + $0xc8] sm:$0xff]  ;;  %1616 = vmatpush.msrb.mxu1 %v1576_v63  ;;  %v1566_v2 = vld [vmem:[%s4305_s3 + $0xa0] sm:$0xff]  ;;  %v1515_v62 = vperm.slane %v2340_v56, 0  ;;  %v1748_v63 = vld [vmem:[%s4306_s4 + $0x58] sm:$0xff] }
 0x1af   :  { %1533 = vmatpush.msrb.mxu3 %v2336_v57  ;;  %v1782_v57 = vld [vmem:[%s4306_s4 + $0x168] sm:$0xff]  ;;  %v1769_v56 = vld [vmem:[%s4306_s4 + $0x100] sm:$0xff] }
 0x1b0   :  { %v1299_v9 = vadd.f32 %v1298_v4, %v1279_v5  ;;  %1617 = vmatpush.msrb.mxu1 %v1571_v36  ;;  %v2332_v5 = vld [vmem:[%s4308_s6 + $0x1e] sm:$0x1f] }
 0x1b1   :  { %1534 = vmatpush.msrb.mxu3 %v2335_v58  ;;  %v1474_v4 = vperm.slane %v2332_v5, 0  ;;  %v1768_v58 = vld [vmem:[%s4306_s4 + $0xf8] sm:$0xff]  ;;  %v1765_v36 = vld [vmem:[%s4306_s4 + $0xe0] sm:$0xff]  ;;  %v1779_v5 = vld [vmem:[%s4306_s4 + $0x150] sm:$0xff] }
 0x1b2   :  { %v1301_v11 = vmax.f32 %v1126_v8, %v1299_v9  ;;  %1618 = vmatpush.msrb.mxu1 %v1566_v2  ;;  %v1747_v2 = vld [vmem:[%s4306_s4 + $0x50] sm:$0xff] }
 0x1b3   :  { %1535 = vmatpush.msrb.mxu3 %v2334_v59  ;;  %v1749_v59 = vld [vmem:[%s4306_s4 + $0x60] sm:$0xff] }
 0x1b4   :  { %v1302_v14 = vmax.f32 %v954_v10, %v1301_v11  ;;  %1619 = vmatpush.msrb.mxu1 %v1561_v3 }
 0x1b6   :  { %v1308_v15 = vadd.f32 %v1306_v13, %v1302_v14  ;;  %1620 = vmatpush.msrb.mxu1 %v1556_v18  ;;  %v1742_v18 = vld [vmem:[%s4306_s4 + $0x28] sm:$0xff] }
 0x1b8   :  { %vm1309_vm8 = vcmp.ge.f32.partialorder %v1308_v15, 0.5  ;;  %v1582_v15 = vld [vmem:[%s4305_s3 + $0x120] sm:$0xff] }
 0x1b9   :  { %v2306_v16 = vsel %vm1309_vm8, 1.0, %v2409_v49  ;;  %1635 = vmatpush.msrb.mxu2 %v1582_v15 }
 0x1ba   :  { %2308 = vmatmul.msk.f32.vlgmr.msra.gmra.mxu0 %vm1326_vm7, %v2306_v16  ;;  %v1583_v16 = vld [vmem:[%s4305_s3 + $0x128] sm:$0xff] }
 0x1bb   :  { %1654 = vmatpush.msra.mxu0 %v1588_v0  ;;  %1636 = vmatpush.msrb.mxu2 %v1577_v19  ;;  %v1766_v0 = vld [vmem:[%s4306_s4 + $0xe8] sm:$0xff] }
 0x1bd   :  { %1655 = vmatpush.msra.mxu0 %v1583_v16  ;;  %v1743_v16 = vld [vmem:[%s4306_s4 + $0x30] sm:$0xff] }
 0x1bf   :  { %1656 = vmatpush.msra.mxu0 %v1578_v20  ;;  %v1741_v20 = vld [vmem:[%s4306_s4 + $0x20] sm:$0xff] }
 0x237   :  { %v1347_v44 = vpop.f32.mrf.mxu0 }
 0x238   :  { %v1348_v25 = vadd.f32 %v1347_v44, %v1324_v24  ;;  %v1551_v24 = vld [vmem:[%s4305_s3 + $0x28] sm:$0xff]  ;;  %v1572_v44 = vld [vmem:[%s4305_s3 + $0xd0] sm:$0xff] }
 0x239   :  { %1621 = vmatpush.msrb.mxu1 %v1551_v24  ;;  %1637 = vmatpush.msrb.mxu2 %v1572_v44  ;;  %v1800_v24 = vld [vmem:[%s4306_s4 + $0x1f8] sm:$0xff]  ;;  %v1799_v44 = vld [vmem:[%s4306_s4 + $0x1f0] sm:$0xff] }
 0x23a   :  { %vm1350_vm9 = vcmp.ge.f32.partialorder %v1348_v25, 0.5  ;;  %v1573_v25 = vld [vmem:[%s4305_s3 + $0xd8] sm:$0xff] }
 0x23b   :  { %v2309_v26 = vsel %vm1350_vm9, 1.0, %v2409_v49  ;;  %1657 = vmatpush.msra.mxu0 %v1573_v25  ;;  %1622 = vmatpush.msrb.mxu1 %v1546_v27  ;;  %v1798_v25 = vld [vmem:[%s4306_s4 + $0x1e8] sm:$0xff]  ;;  %v1796_v27 = vld [vmem:[%s4306_s4 + $0x1d8] sm:$0xff] }
 0x23c   :  { %2317 = vmatmul.msk.f32.vlgmr.msra.gmra.mxu1 %vm61_vm0, %v2309_v26  ;;  %v1574_v26 = vld [vmem:[%s4305_s3 + $0xe0] sm:$0xff]  ;;  %1638 = vmatpush.msrb.mxu2 %v1567_v28  ;;  %v1763_v28 = vld [vmem:[%s4306_s4 + $0xd0] sm:$0xff] }
 0x23d   :  { %1658 = vmatpush.msra.mxu0 %v1568_v29  ;;  %v1776_v29 = vld [vmem:[%s4306_s4 + $0x138] sm:$0xff] }
 0x2b9   :  { %v1385_v31 = vpop.f32.mrf.mxu1 }
 0x2ba   :  { %v1386_v12 = vadd.f32 %v1385_v31, %v1363_v30  ;;  %v1590_v30 = vld [vmem:[%s4305_s3 + $0x160] sm:$0xff] }
 0x2bb   :  { %1694 = vmatpush.msra.mxu1 %v1590_v30  ;;  %v1562_v31 = vld [vmem:[%s4305_s3 + $0x80] sm:$0xff]  ;;  %v1740_v30 = vld [vmem:[%s4306_s4 + $0x18] sm:$0xff] }
 0x2bc   :  { %vm1388_vm11 = vcmp.ge.f32.partialorder %v1386_v12, 0.5  ;;  %v1563_v12 = vld [vmem:[%s4305_s3 + $0x88] sm:$0xff]  ;;  %1639 = vmatpush.msrb.mxu2 %v1562_v31 }
 0x2bd   :  { %v2318_v22 = vsel %vm1388_vm11, 1.0, %v2409_v49  ;;  %1659 = vmatpush.msra.mxu0 %v1563_v12  ;;  %1695 = vmatpush.msra.mxu1 %v1585_v32  ;;  %v1762_v31 = vld [vmem:[%s4306_s4 + $0xc8] sm:$0xff]  ;;  %v1775_v12 = vld [vmem:[%s4306_s4 + $0x130] sm:$0xff] }
 0x2be   :  { %2323 = vmatmul.msk.f32.vlgmr.msrb.gmra.mxu0 %vm1400_vm10, %v2318_v22  ;;  %v1564_v22 = vld [vmem:[%s4305_s3 + $0x90] sm:$0xff]  ;;  %1640 = vmatpush.msrb.mxu2 %v1557_v33  ;;  %v1761_v33 = vld [vmem:[%s4306_s4 + $0xc0] sm:$0xff] }
 0x2bf   :  { %v1739_v32 = vld [vmem:[%s4306_s4 + $0x10] sm:$0xff] }
 0x33b   :  { %v1421_v35 = vpop.f32.mrf.mxu0 }
 0x33c   :  { %v1422_v23 = vadd.f32 %v1421_v35, %v1398_v34  ;;  %v1558_v34 = vld [vmem:[%s4305_s3 + $0x60] sm:$0xff]  ;;  %v1559_v35 = vld [vmem:[%s4305_s3 + $0x68] sm:$0xff] }
 0x33d   :  { %1660 = vmatpush.msra.mxu0 %v1558_v34  ;;  %v1774_v34 = vld [vmem:[%s4306_s4 + $0x128] sm:$0xff] }
 0x33e   :  { %vm1424_vm12 = vcmp.ge.f32.partialorder %v1422_v23, 0.5  ;;  %v1580_v23 = vld [vmem:[%s4305_s3 + $0x110] sm:$0xff] }
 0x33f   :  { %v2324_v37 = vsel %vm1424_vm12, 1.0, %v2409_v49  ;;  %v2327_v49 = vld [vmem:[%s4308_s6 + $0x19] sm:$0x1f]  ;;  %1696 = vmatpush.msra.mxu1 %v1580_v23  ;;  %v1738_v23 = vld [vmem:[%s4306_s4 + $0x8] sm:$0xff] }
 0x340   :  { %v1427_v38 = vmin.f32 %v2324_v37, 1.0  ;;  %v1436_v42 = vperm.slane %v2327_v49, 0  ;;  %v1552_v37 = vld [vmem:[%s4305_s3 + $0x30] sm:$0xff] }
 0x341   :  { %1641 = vmatpush.msrb.mxu2 %v1552_v37  ;;  %v1548_v49 = vld [vmem:[%s4305_s3 + $0x10] sm:$0xff]  ;;  %1697 = vmatpush.msra.mxu1 %v1575_v40  ;;  %v1760_v37 = vld [vmem:[%s4306_s4 + $0xb8] sm:$0xff]  ;;  %v1737_v40 = vld [vmem:[%s4306_s4] sm:$0xff] }
 0x342   :  { %2328 = vmatmul.msk.f32.vlgmr.msra.gmra.mxu3 %vm1428_vm13, %v1427_v38  ;;  %1429 = vst.msk [vmem:[#allocation4] sm:$0xff] %vm1428_vm13, %v1427_v38  ;;  %v1553_v38 = vld [vmem:[%s4305_s3 + $0x38] sm:$0xff] }
 0x343   :  { %1674 = vmatpush.msra.mxu3 %v1589_v1  ;;  %1661 = vmatpush.msra.mxu0 %v1553_v38  ;;  %v1780_v1 = vld [vmem:[%s4306_s4 + $0x158] sm:$0xff]  ;;  %v1773_v38 = vld [vmem:[%s4306_s4 + $0x120] sm:$0xff] }
 0x344   :  { %1642 = vmatpush.msrb.mxu2 %v1547_v41  ;;  %v1759_v41 = vld [vmem:[%s4306_s4 + $0xb0] sm:$0xff] }
 0x345   :  { %1675 = vmatpush.msra.mxu3 %v1584_v17  ;;  %1662 = vmatpush.msra.mxu0 %v1548_v49  ;;  %v1772_v49 = vld [vmem:[%s4306_s4 + $0x118] sm:$0xff] }
 0x347   :  { %1676 = vmatpush.msra.mxu3 %v1579_v21  ;;  %1837 = vmatpush.msrb.mxu0 %v1768_v58  ;;  %v1805_v58 = vld [vmem:[%s4306_s4 + $0x220] sm:$0xff] }
 0x349   :  { %1677 = vmatpush.msra.mxu3 %v1574_v26  ;;  %1838 = vmatpush.msrb.mxu0 %v1767_v60  ;;  %v1797_v26 = vld [vmem:[%s4306_s4 + $0x1e0] sm:$0xff]  ;;  %v1787_v60 = vld [vmem:[%s4306_s4 + $0x190] sm:$0xff] }
 0x34b   :  { %1678 = vmatpush.msra.mxu3 %v1569_v50  ;;  %1839 = vmatpush.msrb.mxu0 %v1766_v0  ;;  %v1795_v50 = vld [vmem:[%s4306_s4 + $0x1d0] sm:$0xff] }
 0x34c   :  { %v1803_v0 = vld [vmem:[%s4306_s4 + $0x210] sm:$0xff] }
 0x34d   :  { %1679 = vmatpush.msra.mxu3 %v1564_v22  ;;  %1840 = vmatpush.msrb.mxu0 %v1765_v36  ;;  %v1794_v22 = vld [vmem:[%s4306_s4 + $0x1c8] sm:$0xff]  ;;  %v1785_v36 = vld [vmem:[%s4306_s4 + $0x180] sm:$0xff] }
 0x34f   :  { %1680 = vmatpush.msra.mxu3 %v1559_v35  ;;  %v1793_v35 = vld [vmem:[%s4306_s4 + $0x1c0] sm:$0xff] }
 0x351   :  { %1681 = vmatpush.msra.mxu3 %v1554_v39  ;;  %v1792_v39 = vld [vmem:[%s4306_s4 + $0x1b8] sm:$0xff] }
 0x3c5   :  { %v1458_v43 = vpop.f32.mrf.mxu3 }
 0x3c6   :  { %v1459_v45 = vadd.f32 %v1458_v43, %v1436_v42  ;;  %v1549_v42 = vld [vmem:[%s4305_s3 + $0x18] sm:$0xff]  ;;  %v1570_v43 = vld [vmem:[%s4305_s3 + $0xc0] sm:$0xff] }
 0x3c7   :  { %1682 = vmatpush.msra.mxu3 %v1549_v42  ;;  %1698 = vmatpush.msra.mxu1 %v1570_v43  ;;  %v1791_v42 = vld [vmem:[%s4306_s4 + $0x1b0] sm:$0xff]  ;;  %v1808_v43 = vld [vmem:[%s4306_s4 + $0x238] sm:$0xff] }
 0x3c8   :  { %v1461_v46 = vmax.f32 %v1459_v45, 0.0  ;;  %v1565_v45 = vld [vmem:[%s4305_s3 + $0x98] sm:$0xff] }
 0x3c9   :  { %1699 = vmatpush.msra.mxu1 %v1565_v45  ;;  %v1758_v45 = vld [vmem:[%s4306_s4 + $0xa8] sm:$0xff] }
 0x3ca   :  { %v1462_v47 = vmin.f32 %v1461_v46, 1.0  ;;  %v1560_v46 = vld [vmem:[%s4305_s3 + $0x70] sm:$0xff] }
 0x3cb   :  { %1700 = vmatpush.msra.mxu1 %v1560_v46  ;;  %v1771_v46 = vld [vmem:[%s4306_s4 + $0x110] sm:$0xff] }
 0x3cc   :  { %v1463_v48 = vmul.f32 255.0, %v1462_v47  ;;  %v1555_v47 = vld [vmem:[%s4305_s3 + $0x48] sm:$0xff] }
 0x3cd   :  { %1701 = vmatpush.msra.mxu1 %v1555_v47  ;;  %v1790_v47 = vld [vmem:[%s4306_s4 + $0x1a8] sm:$0xff] }
 0x3ce   :  { %v1464_v51 = vadd.f32 0.5, %v1463_v48  ;;  %v1550_v48 = vld [vmem:[%s4305_s3 + $0x20] sm:$0xff] }
 0x3cf   :  { %1702 = vmatpush.msra.mxu1 %v1550_v48  ;;  %v1807_v48 = vld [vmem:[%s4306_s4 + $0x230] sm:$0xff] }
 0x3d0   :  { %v1465_v52 = vfloor.f32 %v1464_v51  ;;  %v1752_v51 = vld [vmem:[%s4306_s4 + $0x78] sm:$0xff] }
 0x3d2   :  { %v1466_v53 = vmul.f32 0.003921569, %v1465_v52  ;;  %v1751_v52 = vld [vmem:[%s4306_s4 + $0x70] sm:$0xff] }
 0x3d4   :  { %2333 = vmatmul.msk.f32.vlgmr.msra.gmra.mxu2 %vm1400_vm10, %v1466_v53  ;;  %v1784_v53 = vld [vmem:[%s4306_s4 + $0x178] sm:$0xff] }
 0x3d5   :  { %1817 = vmatpush.msra.mxu2 %v1752_v51  ;;  %v1757_v51 = vld [vmem:[%s4306_s4 + $0xa0] sm:$0xff] }
 0x3d7   :  { %1818 = vmatpush.msra.mxu2 %v1751_v52  ;;  %v1770_v52 = vld [vmem:[%s4306_s4 + $0x108] sm:$0xff] }
 0x3d9   :  { %1819 = vmatpush.msra.mxu2 %v1750_v54  ;;  %v1806_v54 = vld [vmem:[%s4306_s4 + $0x228] sm:$0xff] }
 0x3db   :  { %1820 = vmatpush.msra.mxu2 %v1749_v59  ;;  %v1755_v59 = vld [vmem:[%s4306_s4 + $0x90] sm:$0xff] }
 0x3dd   :  { %1821 = vmatpush.msra.mxu2 %v1748_v63  ;;  %v1786_v63 = vld [vmem:[%s4306_s4 + $0x188] sm:$0xff] }
 0x3df   :  { %1822 = vmatpush.msra.mxu2 %v1747_v2  ;;  %v1802_v2 = vld [vmem:[%s4306_s4 + $0x208] sm:$0xff] }
 0x457   :  { %v1496_v6 = vpop.f32.mrf.mxu2 }
 0x458   :  { %v1497_v7 = vadd.f32 %v1496_v6, %v1474_v4  ;;  %v1764_v4 = vld [vmem:[%s4306_s4 + $0xd8] sm:$0xff] }
 0x459   :  { %1841 = vmatpush.msrb.mxu0 %v1764_v4 }
 0x45a   :  { %v1499_v8 = vmax.f32 %v1497_v7, 0.0  ;;  %v1746_v7 = vld [vmem:[%s4306_s4 + $0x48] sm:$0xff] }
 0x45b   :  { %1823 = vmatpush.msra.mxu2 %v1746_v7  ;;  %1842 = vmatpush.msrb.mxu0 %v1763_v28 }
 0x45c   :  { %v1500_v9 = vmin.f32 %v1499_v8, 1.0  ;;  %v1778_v8 = vld [vmem:[%s4306_s4 + $0x148] sm:$0xff] }
 0x45d   :  { %1843 = vmatpush.msrb.mxu0 %v1762_v31 }
 0x45e   :  { %v1501_v10 = vmul.f32 255.0, %v1500_v9 }
 0x45f   :  { %1844 = vmatpush.msrb.mxu0 %v1761_v33 }
 0x460   :  { %v1502_v11 = vadd.f32 0.5, %v1501_v10  ;;  %v1745_v10 = vld [vmem:[%s4306_s4 + $0x40] sm:$0xff] }
 0x461   :  { %1824 = vmatpush.msra.mxu2 %v1745_v10  ;;  %1845 = vmatpush.msrb.mxu0 %v1760_v37 }
 0x462   :  { %v1503_v13 = vfloor.f32 %v1502_v11  ;;  %v1777_v11 = vld [vmem:[%s4306_s4 + $0x140] sm:$0xff] }
 0x463   :  { %1846 = vmatpush.msrb.mxu0 %v1759_v41 }
 0x464   :  { %v1504_v14 = vmul.f32 0.003921569, %v1503_v13 }
 0x465   :  { %1847 = vmatpush.msrb.mxu0 %v1758_v45 }
 0x466   :  { %2341 = vmatmul.msk.f32.vlgmr.msrb.gmra.mxu3 %vm61_vm0, %v1504_v14  ;;  %v1744_v14 = vld [vmem:[%s4306_s4 + $0x38] sm:$0xff] }
 0x467   :  { %1857 = vmatpush.msrb.mxu3 %v1784_v53  ;;  %1825 = vmatpush.msra.mxu2 %v1744_v14  ;;  %v1789_v53 = vld [vmem:[%s4306_s4 + $0x1a0] sm:$0xff] }
 0x468   :  { %1848 = vmatpush.msrb.mxu0 %v1757_v51  ;;  %v2348_v51 = vld [vmem:[%s4308_s6 + $0x2d] sm:$0x1f] }
 0x469   :  { %1858 = vmatpush.msrb.mxu3 %v1783_v55  ;;  %1826 = vmatpush.msra.mxu2 %v1743_v16  ;;  %v1756_v55 = vld [vmem:[%s4306_s4 + $0x98] sm:$0xff] }
 0x46a   :  { %1849 = vmatpush.msrb.mxu0 %v1756_v55 }
 0x46b   :  { %1859 = vmatpush.msrb.mxu3 %v1782_v57  ;;  %1827 = vmatpush.msra.mxu2 %v1742_v18  ;;  %v1788_v57 = vld [vmem:[%s4306_s4 + $0x198] sm:$0xff] }
 0x46c   :  { %1850 = vmatpush.msrb.mxu0 %v1755_v59 }
 0x46d   :  { %1860 = vmatpush.msrb.mxu3 %v1781_v61  ;;  %1828 = vmatpush.msra.mxu2 %v1741_v20  ;;  %v1804_v61 = vld [vmem:[%s4306_s4 + $0x218] sm:$0xff] }
 0x46f   :  { %1861 = vmatpush.msrb.mxu3 %v1780_v1  ;;  %1829 = vmatpush.msra.mxu2 %v1740_v30  ;;  %v1753_v1 = vld [vmem:[%s4306_s4 + $0x80] sm:$0xff] }
 0x471   :  { %1862 = vmatpush.msrb.mxu3 %v1779_v5  ;;  %1830 = vmatpush.msra.mxu2 %v1739_v32  ;;  %v2342_v5 = vld [vmem:[%s4308_s6 + $0x28] sm:$0x1f]  ;;  %s1929_s6 = sshll.u32 %s4309_s7, 4  ;;  %s1930_s6 = int_to_ptr.hbm [resolvable:$true] %s1929_s6 }
 0x472   :  { %v1594_v4 = vperm.slane %v2342_v5, 0 }
 0x473   :  { %1863 = vmatpush.msrb.mxu3 %v1778_v8  ;;  %1831 = vmatpush.msra.mxu2 %v1738_v23 }
 0x475   :  { %1864 = vmatpush.msrb.mxu3 %v1777_v11  ;;  %1832 = vmatpush.msra.mxu2 %v1737_v40 }
 0x477   :  { %1865 = vmatpush.msrb.mxu3 %v1776_v29 }
 0x479   :  { %1866 = vmatpush.msrb.mxu3 %v1775_v12 }
 0x47b   :  { %1867 = vmatpush.msrb.mxu3 %v1774_v34 }
 0x47d   :  { %1868 = vmatpush.msrb.mxu3 %v1773_v38 }
 0x47f   :  { %1869 = vmatpush.msrb.mxu3 %v1772_v49 }
 0x481   :  { %1870 = vmatpush.msrb.mxu3 %v1771_v46 }
 0x483   :  { %1871 = vmatpush.msrb.mxu3 %v1770_v52  ;;  %v1812_v52 = vperm.slane %v2348_v51, 0 }
 0x485   :  { %1872 = vmatpush.msrb.mxu3 %v1769_v56 }
 0x4e9   :  { %v1537_v3 = vpop.f32.mrf.mxu3 }
 0x4ea   :  { %v1538_v6 = vadd.f32 %v1537_v3, %v1515_v62  ;;  %v1754_v62 = vld [vmem:[%s4306_s4 + $0x88] sm:$0xff]  ;;  %v1801_v3 = vld [vmem:[%s4306_s4 + $0x200] sm:$0xff]  ;;  %s2410_s4 = smov [#allocation4]  }
 0x4eb   :  { %1851 = vmatpush.msrb.mxu0 %v1754_v62  ;;  %s1938_s15 = sshll.u32 %s2410_s4, 4  ;;  %s1939_s15 = int_to_ptr.vmem [resolvable:$true] %s1938_s15 }
 0x4ec   :  { %v1540_v9 = vmax.f32 %v1538_v6, 0.0  ;;  %v1596_v6 = vperm.slane %v2342_v5, 2  ;;  %1943 = dma.vmem_to_hbm [thread:$0]  %s1939_s15, 128, %s1941_s18, [#allocation5]  }
 0x4ed   :  { %1852 = vmatpush.msrb.mxu0 %v1753_v1 }
 0x4ee   :  { %v1541_v13 = vmin.f32 %v1540_v9, 1.0 }
 0x4f0   :  { %v1542_v15 = vmul.f32 255.0, %v1541_v13  ;;  %v1595_v13 = vperm.slane %v2342_v5, 1 }
 0x4f2   :  { %v1543_v17 = vadd.f32 0.5, %v1542_v15  ;;  %v1597_v15 = vperm.slane %v2342_v5, 3 }
 0x4f4   :  { %v1544_v19 = vfloor.f32 %v1543_v17  ;;  %v1598_v17 = vperm.slane %v2342_v5, 4 }
 0x4f6   :  { %v1545_v21 = vmul.f32 0.003921569, %v1544_v19 }
 0x4f8   :  { %2343 = vmatmul.msk.f32.vlgmr.msrb.gmra.mxu1 %vm1326_vm7, %v1545_v21  ;;  %2344 = vmatmul.msk.f32.vlgmr.msrb.gmra.mxu2 %vm1326_vm7, %v1545_v21 }
 0x4f9   :  { %2345 = vmatmul.msk.f32.vlgmr.msra.gmra.mxu0 %vm1326_vm7, %v1545_v21  ;;  %2346 = vmatmul.msk.f32.vlgmr.msra.gmra.mxu3 %vm1326_vm7, %v1545_v21 }
 0x4fa   :  { %1877 = vmatpush.msrb.mxu1 %v1800_v24  ;;  %1905 = vmatpush.msrb.mxu2 %v1808_v43 }
 0x4fc   :  { %1878 = vmatpush.msrb.mxu1 %v1799_v44  ;;  %1906 = vmatpush.msrb.mxu2 %v1807_v48 }
 0x4fe   :  { %1879 = vmatpush.msrb.mxu1 %v1798_v25  ;;  %1907 = vmatpush.msrb.mxu2 %v1806_v54 }
 0x500   :  { %2347 = vmatmul.msk.f32.vlgmr.msra.gmra.mxu1 %vm1326_vm7, %v1545_v21  ;;  %1908 = vmatpush.msrb.mxu2 %v1805_v58 }
 0x501   :  { %1880 = vmatpush.msrb.mxu1 %v1797_v26 }
 0x502   :  { %1909 = vmatpush.msrb.mxu2 %v1804_v61 }
 0x503   :  { %1881 = vmatpush.msrb.mxu1 %v1796_v27 }
 0x504   :  { %1910 = vmatpush.msrb.mxu2 %v1803_v0 }
 0x505   :  { %1882 = vmatpush.msrb.mxu1 %v1795_v50 }
 0x506   :  { %1911 = vmatpush.msrb.mxu2 %v1802_v2 }
 0x507   :  { %1883 = vmatpush.msrb.mxu1 %v1794_v22 }
 0x508   :  { %1912 = vmatpush.msrb.mxu2 %v1801_v3 }
 0x509   :  { %1884 = vmatpush.msrb.mxu1 %v1793_v35 }
 0x50b   :  { %1885 = vmatpush.msrb.mxu1 %v1792_v39 }
 0x50d   :  { %1886 = vmatpush.msrb.mxu1 %v1791_v42 }
 0x50f   :  { %1887 = vmatpush.msrb.mxu1 %v1790_v47 }
 0x511   :  { %1888 = vmatpush.msrb.mxu1 %v1789_v53 }
 0x513   :  { %1889 = vmatpush.msrb.mxu1 %v1788_v57 }
 0x515   :  { %1890 = vmatpush.msrb.mxu1 %v1787_v60 }
 0x517   :  { %1891 = vmatpush.msrb.mxu1 %v1786_v63 }
 0x519   :  { %1892 = vmatpush.msrb.mxu1 %v1785_v36 }
 0x575   :  { %v1624_v7 = vpop.f32.mrf.mxu1 }
 0x576   :  { %v1625_v8 = vadd.f32 %v1624_v7, %v1594_v4  ;;  %v1664_v9 = vpop.f32.mrf.mxu0 }
 0x577   :  { %v1665_v10 = vadd.f32 %v1664_v9, %v1596_v6 }
 0x578   :  { %v1707_v11 = vmax.f32 %v1625_v8, 0.0 }
 0x579   :  { %v1709_v14 = vmax.f32 %v1665_v10, 0.0 }
 0x57a   :  { %v1712_v16 = vmin.f32 %v1707_v11, 1.0 }
 0x57b   :  { %v1714_v18 = vmin.f32 %v1709_v14, 1.0  ;;  %v1644_v19 = vpop.f32.mrf.mxu2 }
 0x57c   :  { %v1717_v20 = vmul.f32 255.0, %v1712_v16  ;;  %v1645_v21 = vadd.f32 %v1644_v19, %v1595_v13  ;;  %v1684_v24 = vpop.f32.mrf.mxu3 }
 0x57d   :  { %v1719_v44 = vmul.f32 255.0, %v1714_v18  ;;  %v1685_v25 = vadd.f32 %v1684_v24, %v1597_v15  ;;  %v1704_v26 = vpop.f32.mrf.mxu1 }
 0x57e   :  { %v1722_v27 = vadd.f32 0.5, %v1717_v20  ;;  %v1708_v28 = vmax.f32 %v1645_v21, 0.0  ;;  %v1705_v29 = vadd.f32 %v1704_v26, %v1598_v17 }
 0x57f   :  { %v1724_v50 = vadd.f32 0.5, %v1719_v44  ;;  %v1710_v30 = vmax.f32 %v1685_v25, 0.0 }
 0x580   :  { %v1727_v31 = vfloor.f32 %v1722_v27  ;;  %v1713_v12 = vmin.f32 %v1708_v28, 1.0  ;;  %v1711_v22 = vmax.f32 %v1705_v29, 0.0 }
 0x581   :  { %v1729_v32 = vfloor.f32 %v1724_v50  ;;  %v1715_v33 = vmin.f32 %v1710_v30, 1.0 }
 0x582   :  { %v1732_v34 = vmul.f32 0.003921569, %v1727_v31  ;;  %v1718_v35 = vmul.f32 255.0, %v1713_v12  ;;  %v1716_v23 = vmin.f32 %v1711_v22, 1.0 }
 0x583   :  { %v1734_v37 = vmul.f32 0.003921569, %v1729_v32  ;;  %v1720_v38 = vmul.f32 255.0, %v1715_v33 }
 0x584   :  { %v1723_v39 = vadd.f32 0.5, %v1718_v35  ;;  %v1721_v40 = vmul.f32 255.0, %v1716_v23  ;;  %1833 = vmatmul.f32.vlgmr.msra.gmra.mxu2 %v1732_v34 }
 0x585   :  { %v1725_v41 = vadd.f32 0.5, %v1720_v38  ;;  %1873 = vmatmul.f32.vlgmr.msrb.gmra.mxu3 %v1734_v37 }
 0x586   :  { %v1728_v49 = vfloor.f32 %v1723_v39  ;;  %v1726_v42 = vadd.f32 0.5, %v1721_v40 }
 0x587   :  { %v1730_v43 = vfloor.f32 %v1725_v41 }
 0x588   :  { %v1733_v45 = vmul.f32 0.003921569, %v1728_v49  ;;  %v1731_v46 = vfloor.f32 %v1726_v42 }
 0x589   :  { %v1735_v47 = vmul.f32 0.003921569, %v1730_v43 }
 0x58a   :  { %v1736_v48 = vmul.f32 0.003921569, %v1731_v46  ;;  %1853 = vmatmul.f32.vlgmr.msrb.gmra.mxu0 %v1733_v45 }
 0x58b   :  { %1893 = vmatmul.f32.vlgmr.msrb.gmra.mxu1 %v1735_v47 }
 0x58c   :  { %2349 = vmatmul.msk.f32.vlgmr.msrb.gmra.mxu2 %vm677_vm6, %v1736_v48 }
 0x607   :  { %v1834_v53 = vpop.f32.mrf.mxu2  ;;  %v1854_v55 = vpop.f32.mrf.mxu0 }
 0x608   :  { %v1835_v54 = vadd.f32 %v1834_v53, %v1812_v52  ;;  %v1874_v57 = vpop.f32.mrf.mxu3  ;;  %v1894_v59 = vpop.f32.mrf.mxu1 }
 0x60a   :  { %v1855_v56 = vadd.f32 %v1854_v55, %v1835_v54 }
 0x60c   :  { %v1875_v58 = vadd.f32 %v1874_v57, %v1855_v56 }
 0x60e   :  { %v1895_v60 = vadd.f32 %v1894_v59, %v1875_v58 }
 0x60f   :  { %v1914_v61 = vpop.f32.mrf.mxu2 }
 0x610   :  { %v1915_v62 = vadd.f32 %v1914_v61, %v1895_v60 }
 0x612   :  { %v1917_v63 = vmul.f32 0.5, %v1915_v62 }
 0x614   :  { %2354 = vtanh.f32 %v1917_v63 }
 0x61a   :  { %v2355_v0 = vpop.eup %2354 }
 0x61b   :  { %v1919_v1 = vadd.f32 1.0, %v2355_v0 }
 0x61d   :  { %v1920_v36 = vmul.f32 0.5, %v1919_v1 }
 0x61f   :  { %1921 = vst.msk [vmem:[#allocation2] sm:$0xff] %vm61_vm0, %v1920_v36 }
 0x620   :  { %1932 = dma.vmem_to_hbm [thread:$0]  %s1928_s20, 128, %s1930_s6, [#allocation3]  }
 0x621   :  { %2404 = dma.done.wait [#allocation3], 128  }
 0x622   :  { %2405 = vsyncadd [#allocation3], 4294967168 }
 0x623   :  { %2406 = dma.done.wait [#allocation5], 128  }
 0x624   :  { %2407 = vsyncadd [#allocation5], 4294967168 }
 0x625   :  { %1952 = vsyncpa [#allocation3], 1 }
 0x626   :  { %1953 = vsyncpa [#allocation5], 1 }

</bundles_post_ra>
